<compile_context>
chip_gen: v7x
topology: tpu7x:2x2x1
jax: 0.10.0
libtpu: 0.0.40
codegen_flags: <defaults>
</compile_context>

<pallas_src>
import functools
import math

import jax
import jax.numpy as jnp
from jax.experimental import pallas as pl
from jax.experimental.pallas import tpu as pltpu

# ----------------------------- model constants ------------------------------
VOCAB = 128           # synthetic vocab size
HIDDEN = 32           # embedding_dim / hidden_size
SPELL_LENGTH = 3      # sum(template), e.g. template = (2, 1)
PSEUDO_TOKEN_ID = VOCAB - 1
MAX_POS = 64          # position-embedding table size
BIG_NEG = -1e9        # finite stand-in for BIG_CONST inside f32 softmax
LN_EPS = 1e-5

H = HIDDEN
assert VOCAB == 4 * HIDDEN, "slab128 packing assumes V == 4*H"

# ---- packed-weight slab row offsets (static; sliced inside the kernel) ------
# slab32: width H=32
OFF_WQ, OFF_WK, OFF_WV, OFF_WO = 0, H, 2 * H, 3 * H
OFF_W2 = 4 * H                                    # (4H, H) block
_VEC = OFF_W2 + 4 * H                             # = 8H = 256
(OFF_BQ, OFF_BK, OFF_BV, OFF_BO, OFF_B2,
 OFF_LN1G, OFF_LN1B, OFF_LN2G, OFF_LN2B,
 OFF_LNFG, OFF_LNFB) = range(_VEC, _VEC + 11)
R32 = ((_VEC + 11 + 7) // 8) * 8                  # 272 rows
# slab128: width 4H = V = 128
OFF_W1, OFF_WLM, OFF_B1 = 0, H, 2 * H
R128 = ((2 * H + 1 + 7) // 8) * 8                 # 72 rows


# ------------------------------- Pallas kernel -------------------------------
def lm_kernel(last_idx, l_pad_shift, tgt_ref, x_ref, mask_ref, w32_ref,
              w128_ref, logits_ref, nll_ref):
    """Single grid step over the whole (flattened) batch.

    tgt_ref : SMEM (B,) int32   scalar-prefetched target token ids
    x_ref   : VMEM (B*L_PAD, H) f32 inputs_embeds (flattened, seq-padded)
    mask_ref: VMEM (1, B*L_PAD) int32 key-side attention mask
    w32_ref : VMEM (R32, H)     packed H-wide weights
    w128_ref: VMEM (R128, 4H)   packed 4H/V-wide weights
    outputs : logits (B, V) f32 lane-dense, per-example nll (B, 1) f32
    """
    x = x_ref[...]                      # (N, H)
    mask_k = mask_ref[...]              # (1, N)
    N = x.shape[0]
    l_pad = 1 << l_pad_shift            # static power of two
    B = N // l_pad
    V = logits_ref.shape[1]

    def ln(h, g, b):
        mu = jnp.mean(h, axis=-1, keepdims=True)
        var = jnp.mean((h - mu) ** 2, axis=-1, keepdims=True)
        return (h - mu) * jax.lax.rsqrt(var + LN_EPS) * g + b

    def row(ref, off):                  # single packed (1, width) row
        return ref[off:off + 1, :]

    # ---- LN -> masked causal single-head self-attention ---------------------
    h = ln(x, row(w32_ref, OFF_LN1G), row(w32_ref, OFF_LN1B))
    q = jnp.dot(h, w32_ref[OFF_WQ:OFF_WQ + H, :],
                preferred_element_type=jnp.float32) + row(w32_ref, OFF_BQ)
    k = jnp.dot(h, w32_ref[OFF_WK:OFF_WK + H, :],
                preferred_element_type=jnp.float32) + row(w32_ref, OFF_BK)
    v = jnp.dot(h, w32_ref[OFF_WV:OFF_WV + H, :],
                preferred_element_type=jnp.float32) + row(w32_ref, OFF_BV)

    scores = jax.lax.dot_general(q, k, (((1,), (1,)), ((), ())),
                                 preferred_element_type=jnp.float32)
    scores = scores * (1.0 / math.sqrt(H))

    ri = jax.lax.broadcasted_iota(jnp.int32, (N, N), 0)
    ci = jax.lax.broadcasted_iota(jnp.int32, (N, N), 1)
    # same-example (block-diagonal) mask: l_pad is a power of two, so the
    # example index is just a right shift (no vector integer division, no
    # per-example boolean accumulation loop).
    same_ex = (ri >> l_pad_shift) == (ci >> l_pad_shift)
    allowed = (ci <= ri) & same_ex & (mask_k > 0)   # causal AND attention mask
    scores = jnp.where(allowed, scores, jnp.float32(BIG_NEG))

    s_max = jnp.max(scores, axis=-1, keepdims=True)
    e = jnp.exp(scores - s_max)
    attn = e * pl.reciprocal(jnp.sum(e, axis=-1, keepdims=True), approx=True)
    ctx = jnp.dot(attn, v, preferred_element_type=jnp.float32)
    x = x + jnp.dot(ctx, w32_ref[OFF_WO:OFF_WO + H, :],
                    preferred_element_type=jnp.float32) + row(w32_ref, OFF_BO)

    # ---- LN -> GELU MLP ------------------------------------------------------
    h = ln(x, row(w32_ref, OFF_LN2G), row(w32_ref, OFF_LN2B))
    hh = jnp.dot(h, w128_ref[OFF_W1:OFF_W1 + H, :],
                 preferred_element_type=jnp.float32) + row(w128_ref, OFF_B1)
    hh = jax.nn.gelu(hh, approximate=True)
    x = x + jnp.dot(hh, w32_ref[OFF_W2:OFF_W2 + 4 * H, :],
                    preferred_element_type=jnp.float32) + row(w32_ref, OFF_B2)

    # ---- final LN + batched LM head on each example's last valid position ---
    h = ln(x, row(w32_ref, OFF_LNFG), row(w32_ref, OFF_LNFB))
    # gather last valid row per example with a tiny selection matmul (MXU)
    rsel = jax.lax.broadcasted_iota(jnp.int32, (B, N), 0)
    csel = jax.lax.broadcasted_iota(jnp.int32, (B, N), 1)
    sel = (csel == rsel * l_pad + last_idx).astype(jnp.float32)     # (B, N)
    last_h = jnp.dot(sel, h, preferred_element_type=jnp.float32)    # (B, H)
    logits = jnp.dot(last_h, w128_ref[OFF_WLM:OFF_WLM + H, :],
                     preferred_element_type=jnp.float32)            # (B, V)
    logits_ref[...] = logits

    # ---- per-example cross entropy: logsumexp(logits) - logits[target] ------
    m = jnp.max(logits, axis=-1, keepdims=True)
    lse = jnp.log(jnp.sum(jnp.exp(logits - m), axis=-1, keepdims=True)) + m
    ri2 = jax.lax.broadcasted_iota(jnp.int32, (B, V), 0)
    ci2 = jax.lax.broadcasted_iota(jnp.int32, (B, V), 1)
    tgt = jnp.zeros((B, V), jnp.int32)
    for b in range(B):                              # scalar reads from SMEM
        tgt = jnp.where(ri2 == b, tgt_ref[b], tgt)
    tgt_logit = jnp.sum(jnp.where(ci2 == tgt, logits, 0.0),
                        axis=-1, keepdims=True)
    nll_ref[...] = lse - tgt_logit


def lm_last_token_loss(inputs_embeds, attention_mask, targets,
                       slab32, slab128, *, last_idx, l_pad_shift):
    """Run the Pallas transformer kernel; returns (logits [B,V], nll [B])."""
    B = inputs_embeds.shape[0]
    V = VOCAB
    l_pad = 1 << l_pad_shift
    N = B * l_pad
    x2d = inputs_embeds.reshape(N, HIDDEN).astype(jnp.float32)
    mask2d = attention_mask.reshape(1, N).astype(jnp.int32)

    kernel = functools.partial(lm_kernel, last_idx, l_pad_shift)

    grid_spec = pltpu.PrefetchScalarGridSpec(
        num_scalar_prefetch=1,              # targets -> SMEM
        grid=(1,),                          # single step: whole batch at once
        in_specs=[
            pl.BlockSpec((N, HIDDEN), lambda i, tgt: (0, 0)),   # activations
            pl.BlockSpec((1, N), lambda i, tgt: (0, 0)),        # key mask
            pl.BlockSpec((R32, HIDDEN), lambda i, tgt: (0, 0)),     # slab32
            pl.BlockSpec((R128, 4 * HIDDEN), lambda i, tgt: (0, 0)),  # slab128
        ],
        out_specs=(
            pl.BlockSpec((B, V), lambda i, tgt: (0, 0)),        # logits
            pl.BlockSpec((B, 1), lambda i, tgt: (0, 0)),        # per-example nll
        ),
    )
    logits, nll = pl.pallas_call(
        kernel,
        grid_spec=grid_spec,
        out_shape=(jax.ShapeDtypeStruct((B, V), jnp.float32),
                   jax.ShapeDtypeStruct((B, 1), jnp.float32)),
        compiler_params=pltpu.CompilerParams(
            dimension_semantics=("arbitrary",)),
    )(targets.astype(jnp.int32), x2d, mask2d, slab32, slab128)
    return logits, nll.reshape(B)


# --------------------------------- JAX glue ----------------------------------
def pack_weights(params):
    """Pack the tiny transformer weights into two pre-padded f32 slabs."""
    rows32 = jnp.concatenate([
        params["wq"], params["wk"], params["wv"], params["wo"], params["w2"],
        params["bq"], params["bk"], params["bv"], params["bo"], params["b2"],
        params["ln1_g"], params["ln1_b"], params["ln2_g"], params["ln2_b"],
        params["lnf_g"], params["lnf_b"],
    ], axis=0).astype(jnp.float32)
    slab32 = jnp.zeros((R32, H), jnp.float32).at[:rows32.shape[0]].set(rows32)
    rows128 = jnp.concatenate(
        [params["w1"], params["wlm"], params["b1"]], axis=0).astype(jnp.float32)
    slab128 = jnp.zeros((R128, 4 * H), jnp.float32).at[:rows128.shape[0]].set(rows128)
    return slab32, slab128


def prompt_encoder(params):
    # TODO(synk): the original PromptEncoder is LSTM+MLP over learned embeddings;
    # the LSTM has no clean Pallas equivalent here, replaced by MLP(ReLU).
    h = params["prompt_emb"] @ params["prompt_w1"] + params["prompt_b1"]
    h = jax.nn.relu(h)
    return h @ params["prompt_w2"] + params["prompt_b2"]   # (S, H)


def ptune_forward(params, x_hs, x_ts, att_mask):
    """Mirror of PTuneForLAMA.forward(x_hs, x_ts, att_mask) -> (loss, logits)."""
    B, T = x_hs.shape
    S = SPELL_LENGTH
    L = T + S
    # pad seq to a power of two (>= 8) so the kernel's same-example mask is a
    # pair of vector shifts and activations sit on clean sublane tiles
    l_pad_shift = max(3, (L - 1).bit_length())
    L_PAD = 1 << l_pad_shift

    # get_query: concat input tokens with pseudo prompt tokens
    queries = jnp.concatenate(
        [x_hs, jnp.full((B, S), PSEUDO_TOKEN_ID, dtype=x_hs.dtype)], axis=1)

    # attention_mask = cat([att_mask, ones(B, S)])
    attention_mask = jnp.concatenate(
        [att_mask, jnp.ones((B, S), dtype=att_mask.dtype)], axis=1)

    # position_ids = cumsum(mask) - 1 ; masked_fill_(mask == 0, 0)
    position_ids = jnp.cumsum(attention_mask, axis=-1) - 1
    position_ids = jnp.where(attention_mask == 0, 0, position_ids)

    # embed_input: token embeddings, replace last S positions with the
    # prompt-encoder output (broadcast over batch)
    raw_embeds = jnp.take(params["wte"], queries, axis=0)            # (B, L, H)
    replace = prompt_encoder(params)                                 # (S, H)
    raw_embeds = raw_embeds.at[:, -S:, :].set(
        jnp.broadcast_to(replace[None], (B, S, HIDDEN)))

    # the LM adds position embeddings gathered at position_ids
    inputs_embeds = raw_embeds + jnp.take(params["wpe"], position_ids, axis=0)

    # pad seq dim to L_PAD with zero embeddings / zero mask (kernel tiling only)
    pad = L_PAD - L
    inputs_embeds = jnp.pad(inputs_embeds.astype(jnp.float32),
                            ((0, 0), (0, pad), (0, 0)))
    mask_padded = jnp.pad(attention_mask.astype(jnp.int32), ((0, 0), (0, pad)))

    slab32, slab128 = pack_weights(params)

    logits, per_ex_nll = lm_last_token_loss(
        inputs_embeds, mask_padded, x_ts[:, 0], slab32, slab128,
        last_idx=L - 1, l_pad_shift=l_pad_shift)
    loss = jnp.mean(per_ex_nll)     # CrossEntropyLoss default reduction='mean'
    return loss, logits


# ----------------------------- deterministic init -----------------------------
def init_params(key):
    Hh, V, S = HIDDEN, VOCAB, SPELL_LENGTH
    ks = jax.random.split(key, 14)

    def nrm(k, shape, scale=0.02):
        return scale * jax.random.normal(k, shape, dtype=jnp.float32)

    z = lambda *shape: jnp.zeros(shape, jnp.float32)
    return dict(
        wte=nrm(ks[0], (V, Hh)),
        wpe=nrm(ks[1], (MAX_POS, Hh)),
        prompt_emb=nrm(ks[2], (S, Hh)),
        prompt_w1=nrm(ks[3], (Hh, Hh)), prompt_b1=z(Hh),
        prompt_w2=nrm(ks[4], (Hh, Hh)), prompt_b2=z(Hh),
        ln1_g=jnp.ones((1, Hh), jnp.float32), ln1_b=z(1, Hh),
        wq=nrm(ks[5], (Hh, Hh)), wk=nrm(ks[6], (Hh, Hh)), wv=nrm(ks[7], (Hh, Hh)),
        bq=z(1, Hh), bk=z(1, Hh), bv=z(1, Hh),
        wo=nrm(ks[8], (Hh, Hh)), bo=z(1, Hh),
        ln2_g=jnp.ones((1, Hh), jnp.float32), ln2_b=z(1, Hh),
        w1=nrm(ks[9], (Hh, 4 * Hh)), b1=z(1, 4 * Hh),
        w2=nrm(ks[10], (4 * Hh, Hh)), b2=z(1, Hh),
        lnf_g=jnp.ones((1, Hh), jnp.float32), lnf_b=z(1, Hh),
        wlm=nrm(ks[11], (Hh, V)),
    )


if __name__ == "__main__":
    key = jax.random.PRNGKey(0)
    kp, kx, kt = jax.random.split(key, 3)
    params = init_params(kp)

    B, T = 2, 8
    x_hs = jax.random.randint(kx, (B, T), 0, VOCAB, dtype=jnp.int32)
    x_ts = jax.random.randint(kt, (B, 1), 0, VOCAB, dtype=jnp.int32)
    att_mask = jnp.ones((B, T), dtype=jnp.int32).at[0, :2].set(0)  # some padding

    loss, logits = jax.jit(ptune_forward)(params, x_hs, x_ts, att_mask)
    jax.block_until_ready((loss, logits))
    assert logits.shape == (B, VOCAB) and loss.shape == ()
    assert bool(jnp.isfinite(loss))
    print("KERNEL_OK")
</pallas_src>

<mosaic_0001>
module attributes {stable_mosaic.version = 11 : i64} {
  func.func @lm_kernel(%arg0: i32, %arg1: memref<2xi32, #tpu.memory_space<smem>>, %arg2: memref<32x32xf32, #tpu.memory_space<vmem>>, %arg3: memref<1x32xi32, #tpu.memory_space<vmem>>, %arg4: memref<272x32xf32, #tpu.memory_space<vmem>>, %arg5: memref<72x128xf32, #tpu.memory_space<vmem>>, %arg6: memref<2x128xf32, #tpu.memory_space<vmem>>, %arg7: memref<2x1xf32, #tpu.memory_space<vmem>>) attributes {dimension_semantics = [#tpu.dimension_semantics<arbitrary>], iteration_bounds = array<i64: 1>, scalar_prefetch = 1 : i64, scratch_operands = 0 : i64, tpu.core_type = #tpu.core_type<tc>, window_params = [{pipeline_mode = #tpu.pipeline_mode<synchronous>, transform_indices = @transform_0, window_bounds = array<i64: 32, 32>}, {pipeline_mode = #tpu.pipeline_mode<synchronous>, transform_indices = @transform_1, window_bounds = array<i64: 1, 32>}, {pipeline_mode = #tpu.pipeline_mode<synchronous>, transform_indices = @transform_2, window_bounds = array<i64: 272, 32>}, {pipeline_mode = #tpu.pipeline_mode<synchronous>, transform_indices = @transform_3, window_bounds = array<i64: 72, 128>}, {pipeline_mode = #tpu.pipeline_mode<synchronous>, transform_indices = @transform_4, window_bounds = array<i64: 2, 128>}, {pipeline_mode = #tpu.pipeline_mode<synchronous>, transform_indices = @transform_5, window_bounds = array<i64: 2, 1>}]} {
    %c0 = arith.constant 0 : index
    %c0_0 = arith.constant 0 : index
    %0 = vector.load %arg2[%c0, %c0_0] : memref<32x32xf32, #tpu.memory_space<vmem>>, vector<32x32xf32>
    %c0_1 = arith.constant 0 : index
    %c0_2 = arith.constant 0 : index
    %1 = vector.load %arg3[%c0_1, %c0_2] : memref<1x32xi32, #tpu.memory_space<vmem>>, vector<1x32xi32>
    %c261 = arith.constant 261 : index
    %c0_3 = arith.constant 0 : index
    %2 = vector.load %arg4[%c261, %c0_3] : memref<272x32xf32, #tpu.memory_space<vmem>>, vector<1x32xf32>
    %c262 = arith.constant 262 : index
    %c0_4 = arith.constant 0 : index
    %3 = vector.load %arg4[%c262, %c0_4] : memref<272x32xf32, #tpu.memory_space<vmem>>, vector<1x32xf32>
    %cst = arith.constant dense<0.000000e+00> : vector<32xf32>
    %4 = vector.multi_reduction <add>, %0, %cst [1] : vector<32x32xf32> to vector<32xf32>
    %5 = vector.shape_cast %4 : vector<32xf32> to vector<32x1xf32>
    %cst_5 = arith.constant 3.200000e+01 : f32
    %6 = vector.broadcast %cst_5 : f32 to vector<32x1xf32>
    %7 = arith.divf %5, %6 : vector<32x1xf32>
    %8 = vector.broadcast %7 : vector<32x1xf32> to vector<32x32xf32>
    %9 = arith.subf %0, %8 : vector<32x32xf32>
    %10 = arith.mulf %9, %9 : vector<32x32xf32>
    %cst_6 = arith.constant dense<0.000000e+00> : vector<32xf32>
    %11 = vector.multi_reduction <add>, %10, %cst_6 [1] : vector<32x32xf32> to vector<32xf32>
    %12 = vector.shape_cast %11 : vector<32xf32> to vector<32x1xf32>
    %cst_7 = arith.constant 3.200000e+01 : f32
    %13 = vector.broadcast %cst_7 : f32 to vector<32x1xf32>
    %14 = arith.divf %12, %13 : vector<32x1xf32>
    %15 = vector.broadcast %7 : vector<32x1xf32> to vector<32x32xf32>
    %16 = arith.subf %0, %15 : vector<32x32xf32>
    %cst_8 = arith.constant 9.99999974E-6 : f32
    %17 = vector.broadcast %cst_8 : f32 to vector<32x1xf32>
    %18 = arith.addf %14, %17 : vector<32x1xf32>
    %19 = math.rsqrt %18 : vector<32x1xf32>
    %20 = vector.broadcast %19 : vector<32x1xf32> to vector<32x32xf32>
    %21 = arith.mulf %16, %20 : vector<32x32xf32>
    %22 = vector.broadcast %2 : vector<1x32xf32> to vector<32x32xf32>
    %23 = arith.mulf %21, %22 : vector<32x32xf32>
    %24 = vector.broadcast %3 : vector<1x32xf32> to vector<32x32xf32>
    %25 = arith.addf %23, %24 : vector<32x32xf32>
    %c0_9 = arith.constant 0 : index
    %c0_10 = arith.constant 0 : index
    %26 = vector.load %arg4[%c0_9, %c0_10] : memref<272x32xf32, #tpu.memory_space<vmem>>, vector<32x32xf32>
    %cst_11 = arith.constant dense<0.000000e+00> : vector<32x32xf32>
    %27 = tpu.matmul %25, %26, %cst_11 {dimension_numbers = #tpu.dot_dimension_numbers<[1], [0], [0], [1], [0, 0, 1, 1], [], []>} : vector<32x32xf32>, vector<32x32xf32>, vector<32x32xf32> -> vector<32x32xf32>
    %c256 = arith.constant 256 : index
    %c0_12 = arith.constant 0 : index
    %28 = vector.load %arg4[%c256, %c0_12] : memref<272x32xf32, #tpu.memory_space<vmem>>, vector<1x32xf32>
    %29 = vector.broadcast %28 : vector<1x32xf32> to vector<32x32xf32>
    %30 = arith.addf %27, %29 : vector<32x32xf32>
    %c32 = arith.constant 32 : index
    %c0_13 = arith.constant 0 : index
    %31 = vector.load %arg4[%c32, %c0_13] : memref<272x32xf32, #tpu.memory_space<vmem>>, vector<32x32xf32>
    %cst_14 = arith.constant dense<0.000000e+00> : vector<32x32xf32>
    %32 = tpu.matmul %25, %31, %cst_14 {dimension_numbers = #tpu.dot_dimension_numbers<[1], [0], [0], [1], [0, 0, 1, 1], [], []>} : vector<32x32xf32>, vector<32x32xf32>, vector<32x32xf32> -> vector<32x32xf32>
    %c257 = arith.constant 257 : index
    %c0_15 = arith.constant 0 : index
    %33 = vector.load %arg4[%c257, %c0_15] : memref<272x32xf32, #tpu.memory_space<vmem>>, vector<1x32xf32>
    %34 = vector.broadcast %33 : vector<1x32xf32> to vector<32x32xf32>
    %35 = arith.addf %32, %34 : vector<32x32xf32>
    %c64 = arith.constant 64 : index
    %c0_16 = arith.constant 0 : index
    %36 = vector.load %arg4[%c64, %c0_16] : memref<272x32xf32, #tpu.memory_space<vmem>>, vector<32x32xf32>
    %cst_17 = arith.constant dense<0.000000e+00> : vector<32x32xf32>
    %37 = tpu.matmul %25, %36, %cst_17 {dimension_numbers = #tpu.dot_dimension_numbers<[1], [0], [0], [1], [0, 0, 1, 1], [], []>} : vector<32x32xf32>, vector<32x32xf32>, vector<32x32xf32> -> vector<32x32xf32>
    %c258 = arith.constant 258 : index
    %c0_18 = arith.constant 0 : index
    %38 = vector.load %arg4[%c258, %c0_18] : memref<272x32xf32, #tpu.memory_space<vmem>>, vector<1x32xf32>
    %39 = vector.broadcast %38 : vector<1x32xf32> to vector<32x32xf32>
    %40 = arith.addf %37, %39 : vector<32x32xf32>
    %cst_19 = arith.constant dense<0.000000e+00> : vector<32x32xf32>
    %41 = tpu.matmul %30, %35, %cst_19 {dimension_numbers = #tpu.dot_dimension_numbers<[1], [1], [0], [0], [0, 0, 1, 0], [], []>} : vector<32x32xf32>, vector<32x32xf32>, vector<32x32xf32> -> vector<32x32xf32>
    %cst_20 = arith.constant 0.176776692 : f32
    %42 = vector.broadcast %cst_20 : f32 to vector<32x32xf32>
    %43 = arith.mulf %41, %42 : vector<32x32xf32>
    %44 = tpu.iota {dimensions = array<i32: 0>} : vector<32x32xi32>
    %45 = tpu.iota {dimensions = array<i32: 1>} : vector<32x32xi32>
    %c4_i32 = arith.constant 4 : i32
    %46 = vector.broadcast %c4_i32 : i32 to vector<32x32xi32>
    %47 = arith.shrsi %44, %46 : vector<32x32xi32>
    %c4_i32_21 = arith.constant 4 : i32
    %48 = vector.broadcast %c4_i32_21 : i32 to vector<32x32xi32>
    %49 = arith.shrsi %45, %48 : vector<32x32xi32>
    %50 = arith.cmpi eq, %47, %49 : vector<32x32xi32>
    %51 = arith.cmpi sle, %45, %44 : vector<32x32xi32>
    %52 = arith.andi %51, %50 : vector<32x32xi1>
    %c0_i32 = arith.constant 0 : i32
    %53 = vector.broadcast %c0_i32 : i32 to vector<1x32xi32>
    %54 = arith.cmpi sgt, %1, %53 : vector<1x32xi32>
    %55 = vector.broadcast %54 : vector<1x32xi1> to vector<32x32xi1>
    %56 = arith.andi %52, %55 : vector<32x32xi1>
    %cst_22 = arith.constant -1.000000e+09 : f32
    %57 = vector.broadcast %cst_22 : f32 to vector<32x32xf32>
    %58 = arith.select %56, %43, %57 : vector<32x32xi1>, vector<32x32xf32>
    %cst_23 = arith.constant dense<0xFF800000> : vector<32xf32>
    %59 = vector.multi_reduction <maximumf>, %58, %cst_23 [1] : vector<32x32xf32> to vector<32xf32>
    %60 = vector.shape_cast %59 : vector<32xf32> to vector<32x1xf32>
    %61 = vector.broadcast %60 : vector<32x1xf32> to vector<32x32xf32>
    %62 = arith.subf %58, %61 : vector<32x32xf32>
    %63 = math.exp %62 : vector<32x32xf32>
    %cst_24 = arith.constant dense<0.000000e+00> : vector<32xf32>
    %64 = vector.multi_reduction <add>, %63, %cst_24 [1] : vector<32x32xf32> to vector<32xf32>
    %65 = vector.shape_cast %64 : vector<32xf32> to vector<32x1xf32>
    %66 = tpu.reciprocal %65 {approx = true} : vector<32x1xf32> -> vector<32x1xf32>
    %67 = vector.broadcast %66 : vector<32x1xf32> to vector<32x32xf32>
    %68 = arith.mulf %63, %67 : vector<32x32xf32>
    %cst_25 = arith.constant dense<0.000000e+00> : vector<32x32xf32>
    %69 = tpu.matmul %68, %40, %cst_25 {dimension_numbers = #tpu.dot_dimension_numbers<[1], [0], [0], [1], [0, 0, 1, 1], [], []>} : vector<32x32xf32>, vector<32x32xf32>, vector<32x32xf32> -> vector<32x32xf32>
    %c96 = arith.constant 96 : index
    %c0_26 = arith.constant 0 : index
    %70 = vector.load %arg4[%c96, %c0_26] : memref<272x32xf32, #tpu.memory_space<vmem>>, vector<32x32xf32>
    %cst_27 = arith.constant dense<0.000000e+00> : vector<32x32xf32>
    %71 = tpu.matmul %69, %70, %cst_27 {dimension_numbers = #tpu.dot_dimension_numbers<[1], [0], [0], [1], [0, 0, 1, 1], [], []>} : vector<32x32xf32>, vector<32x32xf32>, vector<32x32xf32> -> vector<32x32xf32>
    %72 = arith.addf %0, %71 : vector<32x32xf32>
    %c259 = arith.constant 259 : index
    %c0_28 = arith.constant 0 : index
    %73 = vector.load %arg4[%c259, %c0_28] : memref<272x32xf32, #tpu.memory_space<vmem>>, vector<1x32xf32>
    %74 = vector.broadcast %73 : vector<1x32xf32> to vector<32x32xf32>
    %75 = arith.addf %72, %74 : vector<32x32xf32>
    %c263 = arith.constant 263 : index
    %c0_29 = arith.constant 0 : index
    %76 = vector.load %arg4[%c263, %c0_29] : memref<272x32xf32, #tpu.memory_space<vmem>>, vector<1x32xf32>
    %c264 = arith.constant 264 : index
    %c0_30 = arith.constant 0 : index
    %77 = vector.load %arg4[%c264, %c0_30] : memref<272x32xf32, #tpu.memory_space<vmem>>, vector<1x32xf32>
    %cst_31 = arith.constant dense<0.000000e+00> : vector<32xf32>
    %78 = vector.multi_reduction <add>, %75, %cst_31 [1] : vector<32x32xf32> to vector<32xf32>
    %79 = vector.shape_cast %78 : vector<32xf32> to vector<32x1xf32>
    %cst_32 = arith.constant 3.200000e+01 : f32
    %80 = vector.broadcast %cst_32 : f32 to vector<32x1xf32>
    %81 = arith.divf %79, %80 : vector<32x1xf32>
    %82 = vector.broadcast %81 : vector<32x1xf32> to vector<32x32xf32>
    %83 = arith.subf %75, %82 : vector<32x32xf32>
    %84 = arith.mulf %83, %83 : vector<32x32xf32>
    %cst_33 = arith.constant dense<0.000000e+00> : vector<32xf32>
    %85 = vector.multi_reduction <add>, %84, %cst_33 [1] : vector<32x32xf32> to vector<32xf32>
    %86 = vector.shape_cast %85 : vector<32xf32> to vector<32x1xf32>
    %cst_34 = arith.constant 3.200000e+01 : f32
    %87 = vector.broadcast %cst_34 : f32 to vector<32x1xf32>
    %88 = arith.divf %86, %87 : vector<32x1xf32>
    %89 = vector.broadcast %81 : vector<32x1xf32> to vector<32x32xf32>
    %90 = arith.subf %75, %89 : vector<32x32xf32>
    %cst_35 = arith.constant 9.99999974E-6 : f32
    %91 = vector.broadcast %cst_35 : f32 to vector<32x1xf32>
    %92 = arith.addf %88, %91 : vector<32x1xf32>
    %93 = math.rsqrt %92 : vector<32x1xf32>
    %94 = vector.broadcast %93 : vector<32x1xf32> to vector<32x32xf32>
    %95 = arith.mulf %90, %94 : vector<32x32xf32>
    %96 = vector.broadcast %76 : vector<1x32xf32> to vector<32x32xf32>
    %97 = arith.mulf %95, %96 : vector<32x32xf32>
    %98 = vector.broadcast %77 : vector<1x32xf32> to vector<32x32xf32>
    %99 = arith.addf %97, %98 : vector<32x32xf32>
    %c0_36 = arith.constant 0 : index
    %c0_37 = arith.constant 0 : index
    %100 = vector.load %arg5[%c0_36, %c0_37] : memref<72x128xf32, #tpu.memory_space<vmem>>, vector<32x128xf32>
    %cst_38 = arith.constant dense<0.000000e+00> : vector<32x128xf32>
    %101 = tpu.matmul %99, %100, %cst_38 {dimension_numbers = #tpu.dot_dimension_numbers<[1], [0], [0], [1], [0, 0, 1, 1], [], []>} : vector<32x32xf32>, vector<32x128xf32>, vector<32x128xf32> -> vector<32x128xf32>
    %c64_39 = arith.constant 64 : index
    %c0_40 = arith.constant 0 : index
    %102 = vector.load %arg5[%c64_39, %c0_40] : memref<72x128xf32, #tpu.memory_space<vmem>>, vector<1x128xf32>
    %103 = vector.broadcast %102 : vector<1x128xf32> to vector<32x128xf32>
    %104 = arith.addf %101, %103 : vector<32x128xf32>
    %105 = arith.mulf %104, %104 : vector<32x128xf32>
    %106 = arith.mulf %104, %105 : vector<32x128xf32>
    %cst_41 = arith.constant 4.471500e-02 : f32
    %107 = vector.broadcast %cst_41 : f32 to vector<32x128xf32>
    %108 = arith.mulf %107, %106 : vector<32x128xf32>
    %109 = arith.addf %104, %108 : vector<32x128xf32>
    %cst_42 = arith.constant 0.797884583 : f32
    %110 = vector.broadcast %cst_42 : f32 to vector<32x128xf32>
    %111 = arith.mulf %110, %109 : vector<32x128xf32>
    %112 = math.tanh %111 : vector<32x128xf32>
    %cst_43 = arith.constant 1.000000e+00 : f32
    %113 = vector.broadcast %cst_43 : f32 to vector<32x128xf32>
    %114 = arith.addf %113, %112 : vector<32x128xf32>
    %cst_44 = arith.constant 5.000000e-01 : f32
    %115 = vector.broadcast %cst_44 : f32 to vector<32x128xf32>
    %116 = arith.mulf %115, %114 : vector<32x128xf32>
    %117 = arith.mulf %104, %116 : vector<32x128xf32>
    %c128 = arith.constant 128 : index
    %c0_45 = arith.constant 0 : index
    %118 = vector.load %arg4[%c128, %c0_45] : memref<272x32xf32, #tpu.memory_space<vmem>>, vector<128x32xf32>
    %cst_46 = arith.constant dense<0.000000e+00> : vector<32x32xf32>
    %119 = tpu.matmul %117, %118, %cst_46 {dimension_numbers = #tpu.dot_dimension_numbers<[1], [0], [0], [1], [0, 0, 1, 1], [], []>} : vector<32x128xf32>, vector<128x32xf32>, vector<32x32xf32> -> vector<32x32xf32>
    %120 = arith.addf %75, %119 : vector<32x32xf32>
    %c260 = arith.constant 260 : index
    %c0_47 = arith.constant 0 : index
    %121 = vector.load %arg4[%c260, %c0_47] : memref<272x32xf32, #tpu.memory_space<vmem>>, vector<1x32xf32>
    %122 = vector.broadcast %121 : vector<1x32xf32> to vector<32x32xf32>
    %123 = arith.addf %120, %122 : vector<32x32xf32>
    %c265 = arith.constant 265 : index
    %c0_48 = arith.constant 0 : index
    %124 = vector.load %arg4[%c265, %c0_48] : memref<272x32xf32, #tpu.memory_space<vmem>>, vector<1x32xf32>
    %c266 = arith.constant 266 : index
    %c0_49 = arith.constant 0 : index
    %125 = vector.load %arg4[%c266, %c0_49] : memref<272x32xf32, #tpu.memory_space<vmem>>, vector<1x32xf32>
    %cst_50 = arith.constant dense<0.000000e+00> : vector<32xf32>
    %126 = vector.multi_reduction <add>, %123, %cst_50 [1] : vector<32x32xf32> to vector<32xf32>
    %127 = vector.shape_cast %126 : vector<32xf32> to vector<32x1xf32>
    %cst_51 = arith.constant 3.200000e+01 : f32
    %128 = vector.broadcast %cst_51 : f32 to vector<32x1xf32>
    %129 = arith.divf %127, %128 : vector<32x1xf32>
    %130 = vector.broadcast %129 : vector<32x1xf32> to vector<32x32xf32>
    %131 = arith.subf %123, %130 : vector<32x32xf32>
    %132 = arith.mulf %131, %131 : vector<32x32xf32>
    %cst_52 = arith.constant dense<0.000000e+00> : vector<32xf32>
    %133 = vector.multi_reduction <add>, %132, %cst_52 [1] : vector<32x32xf32> to vector<32xf32>
    %134 = vector.shape_cast %133 : vector<32xf32> to vector<32x1xf32>
    %cst_53 = arith.constant 3.200000e+01 : f32
    %135 = vector.broadcast %cst_53 : f32 to vector<32x1xf32>
    %136 = arith.divf %134, %135 : vector<32x1xf32>
    %137 = vector.broadcast %129 : vector<32x1xf32> to vector<32x32xf32>
    %138 = arith.subf %123, %137 : vector<32x32xf32>
    %cst_54 = arith.constant 9.99999974E-6 : f32
    %139 = vector.broadcast %cst_54 : f32 to vector<32x1xf32>
    %140 = arith.addf %136, %139 : vector<32x1xf32>
    %141 = math.rsqrt %140 : vector<32x1xf32>
    %142 = vector.broadcast %141 : vector<32x1xf32> to vector<32x32xf32>
    %143 = arith.mulf %138, %142 : vector<32x32xf32>
    %144 = vector.broadcast %124 : vector<1x32xf32> to vector<32x32xf32>
    %145 = arith.mulf %143, %144 : vector<32x32xf32>
    %146 = vector.broadcast %125 : vector<1x32xf32> to vector<32x32xf32>
    %147 = arith.addf %145, %146 : vector<32x32xf32>
    %148 = tpu.iota {dimensions = array<i32: 0>} : vector<2x32xi32>
    %149 = tpu.iota {dimensions = array<i32: 1>} : vector<2x32xi32>
    %c16_i32 = arith.constant 16 : i32
    %150 = vector.broadcast %c16_i32 : i32 to vector<2x32xi32>
    %151 = arith.muli %148, %150 : vector<2x32xi32>
    %c10_i32 = arith.constant 10 : i32
    %152 = vector.broadcast %c10_i32 : i32 to vector<2x32xi32>
    %153 = arith.addi %151, %152 : vector<2x32xi32>
    %154 = arith.cmpi eq, %149, %153 : vector<2x32xi32>
    %155 = arith.extui %154 : vector<2x32xi1> to vector<2x32xi32>
    %156 = arith.sitofp %155 : vector<2x32xi32> to vector<2x32xf32>
    %cst_55 = arith.constant dense<0.000000e+00> : vector<2x32xf32>
    %157 = tpu.matmul %156, %147, %cst_55 {dimension_numbers = #tpu.dot_dimension_numbers<[1], [0], [0], [1], [0, 0, 1, 1], [], []>} : vector<2x32xf32>, vector<32x32xf32>, vector<2x32xf32> -> vector<2x32xf32>
    %c32_56 = arith.constant 32 : index
    %c0_57 = arith.constant 0 : index
    %158 = vector.load %arg5[%c32_56, %c0_57] : memref<72x128xf32, #tpu.memory_space<vmem>>, vector<32x128xf32>
    %cst_58 = arith.constant dense<0.000000e+00> : vector<2x128xf32>
    %159 = tpu.matmul %157, %158, %cst_58 {dimension_numbers = #tpu.dot_dimension_numbers<[1], [0], [0], [1], [0, 0, 1, 1], [], []>} : vector<2x32xf32>, vector<32x128xf32>, vector<2x128xf32> -> vector<2x128xf32>
    %c0_59 = arith.constant 0 : index
    %c0_60 = arith.constant 0 : index
    %160 = vector.load %arg6[%c0_59, %c0_60] : memref<2x128xf32, #tpu.memory_space<vmem>>, vector<2x128xf32>
    tpu.vector_store %arg6[%c0_59, %c0_60], %159 {strides = array<i32>} : memref<2x128xf32, #tpu.memory_space<vmem>>, vector<2x128xf32>,
    %cst_61 = arith.constant dense<0xFF800000> : vector<2xf32>
    %161 = vector.multi_reduction <maximumf>, %159, %cst_61 [1] : vector<2x128xf32> to vector<2xf32>
    %162 = vector.shape_cast %161 : vector<2xf32> to vector<2x1xf32>
    %163 = vector.broadcast %162 : vector<2x1xf32> to vector<2x128xf32>
    %164 = arith.subf %159, %163 : vector<2x128xf32>
    %165 = math.exp %164 : vector<2x128xf32>
    %cst_62 = arith.constant dense<0.000000e+00> : vector<2xf32>
    %166 = vector.multi_reduction <add>, %165, %cst_62 [1] : vector<2x128xf32> to vector<2xf32>
    %167 = vector.shape_cast %166 : vector<2xf32> to vector<2x1xf32>
    %168 = math.log %167 : vector<2x1xf32>
    %169 = arith.addf %168, %162 : vector<2x1xf32>
    %170 = tpu.iota {dimensions = array<i32: 0>} : vector<2x128xi32>
    %171 = tpu.iota {dimensions = array<i32: 1>} : vector<2x128xi32>
    %c0_i32_63 = arith.constant 0 : i32
    %172 = vector.broadcast %c0_i32_63 : i32 to vector<2x128xi32>
    %c0_i32_64 = arith.constant 0 : i32
    %173 = vector.broadcast %c0_i32_64 : i32 to vector<2x128xi32>
    %174 = arith.cmpi eq, %170, %173 : vector<2x128xi32>
    %c0_65 = arith.constant 0 : index
    %175 = memref.load %arg1[%c0_65] : memref<2xi32, #tpu.memory_space<smem>>
    %176 = vector.broadcast %175 : i32 to vector<2x128xi32>
    %177 = arith.select %174, %176, %172 : vector<2x128xi1>, vector<2x128xi32>
    %c1_i32 = arith.constant 1 : i32
    %178 = vector.broadcast %c1_i32 : i32 to vector<2x128xi32>
    %179 = arith.cmpi eq, %170, %178 : vector<2x128xi32>
    %c1 = arith.constant 1 : index
    %180 = memref.load %arg1[%c1] : memref<2xi32, #tpu.memory_space<smem>>
    %181 = vector.broadcast %180 : i32 to vector<2x128xi32>
    %182 = arith.select %179, %181, %177 : vector<2x128xi1>, vector<2x128xi32>
    %183 = arith.cmpi eq, %171, %182 : vector<2x128xi32>
    %cst_66 = arith.constant 0.000000e+00 : f32
    %184 = vector.broadcast %cst_66 : f32 to vector<2x128xf32>
    %185 = arith.select %183, %159, %184 : vector<2x128xi1>, vector<2x128xf32>
    %cst_67 = arith.constant dense<0.000000e+00> : vector<2xf32>
    %186 = vector.multi_reduction <add>, %185, %cst_67 [1] : vector<2x128xf32> to vector<2xf32>
    %187 = vector.shape_cast %186 : vector<2xf32> to vector<2x1xf32>
    %188 = arith.subf %169, %187 : vector<2x1xf32>
    %c0_68 = arith.constant 0 : index
    %c0_69 = arith.constant 0 : index
    %189 = vector.load %arg7[%c0_68, %c0_69] : memref<2x1xf32, #tpu.memory_space<vmem>>, vector<2x1xf32>
    tpu.vector_store %arg7[%c0_68, %c0_69], %188 {strides = array<i32>} : memref<2x1xf32, #tpu.memory_space<vmem>>, vector<2x1xf32>,
    return
  }
  func.func @transform_0(%arg0: i32, %arg1: memref<2xi32, #tpu.memory_space<smem>>) -> (i32, i32) {
    %c0_i32 = arith.constant 0 : i32
    %c0_i32_0 = arith.constant 0 : i32
    %c0_i32_1 = arith.constant 0 : i32
    return %c0_i32, %c0_i32_0 : i32, i32
  }
  func.func @transform_1(%arg0: i32, %arg1: memref<2xi32, #tpu.memory_space<smem>>) -> (i32, i32) {
    %c0_i32 = arith.constant 0 : i32
    %c0_i32_0 = arith.constant 0 : i32
    %c0_i32_1 = arith.constant 0 : i32
    return %c0_i32, %c0_i32_0 : i32, i32
  }
  func.func @transform_2(%arg0: i32, %arg1: memref<2xi32, #tpu.memory_space<smem>>) -> (i32, i32) {
    %c0_i32 = arith.constant 0 : i32
    %c0_i32_0 = arith.constant 0 : i32
    %c0_i32_1 = arith.constant 0 : i32
    return %c0_i32, %c0_i32_0 : i32, i32
  }
  func.func @transform_3(%arg0: i32, %arg1: memref<2xi32, #tpu.memory_space<smem>>) -> (i32, i32) {
    %c0_i32 = arith.constant 0 : i32
    %c0_i32_0 = arith.constant 0 : i32
    %c0_i32_1 = arith.constant 0 : i32
    return %c0_i32, %c0_i32_0 : i32, i32
  }
  func.func @transform_4(%arg0: i32, %arg1: memref<2xi32, #tpu.memory_space<smem>>) -> (i32, i32) {
    %c0_i32 = arith.constant 0 : i32
    %c0_i32_0 = arith.constant 0 : i32
    %c0_i32_1 = arith.constant 0 : i32
    return %c0_i32, %c0_i32_0 : i32, i32
  }
  func.func @transform_5(%arg0: i32, %arg1: memref<2xi32, #tpu.memory_space<smem>>) -> (i32, i32) {
    %c0_i32 = arith.constant 0 : i32
    %c0_i32_0 = arith.constant 0 : i32
    %c0_i32_1 = arith.constant 0 : i32
    return %c0_i32, %c0_i32_0 : i32, i32
  }
}

</mosaic_0001>

<bundles_post_ra>
// kernel: ptune_forward.1
= control target key start
LH: loop header
LB: loop body
LE: loop exit
PB: predicated region body
PF: predicated region fallthrough
CT: control target
= control target key end

     0   :  { %s2266_s0 = inlined_call_operand.vmem [shape: s32[2], index: 0, kind: input, shape index: {}]   ;;  %s2267_s1 = inlined_call_operand.vmem [shape: f32[32,32], index: 1, kind: input, shape index: {}]   ;;  %s2268_s2 = inlined_call_operand.vmem [shape: s32[1,32], index: 2, kind: input, shape index: {}]   ;;  %s2269_s3 = inlined_call_operand.vmem [shape: f32[272,32], index: 3, kind: input, shape index: {}]   ;;  %s2270_s4 = inlined_call_operand.vmem [shape: f32[72,128], index: 4, kind: input, shape index: {}]   ;;  %s2271_s5 = inlined_call_operand.hbm [shape: f32[2,128], index: 5, kind: output, shape index: {0}]   ;;  %s2272_s6 = inlined_call_operand.vmem [shape: f32[2,1], index: 6, kind: output, shape index: {1}]  }
   0x1   :  { %s12_s23 = sshll.u32 %s2266_s0, 4  ;;  %s13_s23 = int_to_ptr.vmem [resolvable:$true] %s12_s23 }
   0x2   :  { %s1858_s24 = scalar_lea.vmem %s13_s23, 16  ;;  %p1863_p1 = scmp.lt.s32.totalorder %s13_s23, %s13_s23 }
   0x3   :  { %p1859_p0 = scmp.ne.s32.totalorder %s13_s23, %s1858_s24  ;;  %p1864_p2 = scmp.lt.s32.totalorder %s1858_s24, %s1858_s24 }
   0x5   :  { %p1865_p3 = por %p1864_p2, %p1863_p1 }
   0x7   :  { %p1866_p4 = pnand %p1865_p3, %p1859_p0 }
   0x9   :  { %1869 = shalt.err (!%p1866_p4)  }
   0xa   :  { %s1896_s25 = smov [#allocation3]  }
   0xb   :  { %15 = dma.vmem_to_smem %s13_s23, 16, %s1896_s25, [#allocation2] }
   0xc   :  { %1892 = dma.done.wait [#allocation2], 16 }
   0xd   :  { %1893 = vsyncadd [#allocation2], 4294967280 }
   0xe   :  { %17 = sfence }
   0xf   :  { %v1943_v0 = vld [vmem:[%s2267_s1] sm:$0xff]  ;;  %vm34_vm0 = vcmask 261120   ;;  %v1948_v1 = vld [vmem:[%s2267_s1 + $0x10] sm:$0xff]  ;;  %v1953_v2 = vld [vmem:[%s2267_s1 + $0x8] sm:$0xff] }
  0x10   :  { %v35_v3 = vsel %vm34_vm0, %v1943_v0, 0.0  ;;  %v41_v4 = vsel %vm34_vm0, %v1948_v1, 0.0  ;;  %v1962_v5 = vld [vmem:[%s2267_s1 + $0x18] sm:$0xff] }
  0x11   :  { %18 = vsyncpa [#allocation5], 0  ;;  %36 = vadd.xlane.f32.xlu0 %v35_v3  ;;  %42 = vadd.xlane.f32.xlu1 %v41_v4  ;;  %v38_v6 = vsel %vm34_vm0, %v1953_v2, 0.0  ;;  %v44_v7 = vsel %vm34_vm0, %v1962_v5, 0.0  ;;  %v104_v28 = vld [vmem:[%s2269_s3] sm:$0xff]  ;;  %v105_v29 = vld [vmem:[%s2269_s3 + $0x8] sm:$0xff] }
  0x12   :  { %v304_v30 = vld [vmem:[%s2269_s3 + $0x40] sm:$0xff]  ;;  %v1696_v31 = vpack.c.bf16 %v105_v29, %v104_v28  ;;  %v305_v32 = vld [vmem:[%s2269_s3 + $0x48] sm:$0xff]  ;;  %v106_v33 = vld [vmem:[%s2269_s3 + $0x10] sm:$0xff]  ;;  %s1371_s7 = sld [smem:[#allocation3]]  ;;  %s1451_s8 = sld [smem:[#allocation3 + $0x1]] }
  0x13   :  { %v107_v34 = vld [vmem:[%s2269_s3 + $0x18] sm:$0xff]  ;;  %v1712_v35 = vpack.c.bf16 %v305_v32, %v304_v30  ;;  %v306_v37 = vld [vmem:[%s2269_s3 + $0x50] sm:$0xff]  ;;  %v210_v40 = vld [vmem:[%s2269_s3 + $0x20] sm:$0xff] }
  0x14   :  { %v1700_v36 = vpack.c.bf16 %v107_v34, %v106_v33  ;;  %1697 = vmatprep.subr.bf16.mxu1 %v1696_v31  ;;  %v307_v38 = vld [vmem:[%s2269_s3 + $0x58] sm:$0xff]  ;;  %v211_v41 = vld [vmem:[%s2269_s3 + $0x28] sm:$0xff]  ;;  %v1404_v56 = vld [vmem:[%s2269_s3 + $0x105] ss:$0 sm:$0xff] }
  0x15   :  { %39 = vadd.xlane.f32.xlu0 %v38_v6  ;;  %45 = vadd.xlane.f32.xlu1 %v44_v7  ;;  %v1716_v39 = vpack.c.bf16 %v307_v38, %v306_v37  ;;  %v1704_v42 = vpack.c.bf16 %v211_v41, %v210_v40  ;;  %v1405_v58 = vld [vmem:[%s2269_s3 + $0x106] ss:$0 sm:$0xff]  ;;  %v212_v4 = vld [vmem:[%s2269_s3 + $0x30] sm:$0xff]  ;;  %v213_v6 = vld [vmem:[%s2269_s3 + $0x38] sm:$0xff] }
  0x16   :  { %1713 = vmatprep.subr.bf16.mxu0 %v1712_v35  ;;  %1699 = vmatpush3.bf16.msra.mxu1 %v1696_v31  ;;  %v1411_v32 = vld [vmem:[%s2269_s3 + $0x101] ss:$0 sm:$0xff]  ;;  %vm1721_vm1 = vmpackc.low %vm34_vm0, %vm34_vm0 }
  0x17   :  { %1715 = vmatpush3.bf16.msra.mxu0 %v1712_v35  ;;  %1701 = vmatprep.subr.bf16.mxu1 %v1700_v36 }
  0x18   :  { %1717 = vmatprep.subr.bf16.mxu0 %v1716_v39 }
  0x1a   :  { %1703 = vmatpush3.bf16.msra.mxu1 %v1700_v36 }
  0x1b   :  { %1719 = vmatpush3.bf16.msra.mxu0 %v1716_v39  ;;  %1705 = vmatprep.subr.bf16.mxu1 %v1704_v42 }
  0x9e   :  { %v37_v8 = vpop.xlane.xlu0 %36  ;;  %v43_v9 = vpop.xlane.xlu1 %42 }
  0x9f   :  { %v48_v10 = vmul.f32 0.03125, %v37_v8  ;;  %v50_v11 = vmul.f32 0.03125, %v43_v9 }
  0xa1   :  { %v52_v12 = vsub.f32 %v1943_v0, %v48_v10  ;;  %v1970_v13 = vsub.f32 %v1948_v1, %v50_v11 }
  0xa2   :  { %v40_v14 = vpop.xlane.xlu0 %39  ;;  %v46_v15 = vpop.xlane.xlu1 %45 }
  0xa3   :  { %v49_v16 = vmul.f32 0.03125, %v40_v14  ;;  %v51_v17 = vmul.f32 0.03125, %v46_v15  ;;  %v56_v18 = vmul.f32 %v52_v12, %v52_v12  ;;  %v58_v19 = vmul.f32 %v1970_v13, %v1970_v13 }
  0xa5   :  { %v53_v20 = vsub.f32 %v1953_v2, %v49_v16  ;;  %v1976_v21 = vsub.f32 %v1962_v5, %v51_v17  ;;  %v60_v22 = vsel %vm34_vm0, %v56_v18, 0.0  ;;  %v66_v23 = vsel %vm34_vm0, %v58_v19, 0.0  ;;  %v1416_v16 = vld [vmem:[%s2269_s3 + $0x102] ss:$0 sm:$0xff]  ;;  %v1406_v17 = vld [vmem:[%s2269_s3 + $0x100] ss:$0 sm:$0xff] }
  0xa6   :  { %61 = vadd.xlane.f32.xlu0 %v60_v22 }
  0xa7   :  { %v57_v24 = vmul.f32 %v53_v20, %v53_v20  ;;  %v59_v25 = vmul.f32 %v1976_v21, %v1976_v21 }
  0xa9   :  { %v63_v26 = vsel %vm34_vm0, %v57_v24, 0.0  ;;  %v69_v27 = vsel %vm34_vm0, %v59_v25, 0.0 }
  0xaa   :  { %67 = vadd.xlane.f32.xlu0 %v66_v23  ;;  %64 = vadd.xlane.f32.xlu1 %v63_v26 }
  0xae   :  { %70 = vadd.xlane.f32.xlu1 %v69_v27 }
 0x133   :  { %v62_v43 = vpop.xlane.xlu0 %61 }
 0x134   :  { %v72_v44 = vmul.f32 0.03125, %v62_v43 }
 0x136   :  { %v76_v45 = vadd.f32 1e-05, %v72_v44 }
 0x137   :  { %v65_v46 = vpop.xlane.xlu1 %64  ;;  %v68_v47 = vpop.xlane.xlu0 %67 }
 0x138   :  { %1806 = vrsqrt.f32 %v76_v45  ;;  %v73_v48 = vmul.f32 0.03125, %v65_v46  ;;  %v74_v49 = vmul.f32 0.03125, %v68_v47  ;;  %v511_v47 = vlaneseq }
 0x13a   :  { %v77_v50 = vadd.f32 1e-05, %v73_v48  ;;  %v78_v51 = vadd.f32 1e-05, %v74_v49  ;;  %v2055_v48 = vshrl.u32 %v511_v47, 7 }
 0x13b   :  { %v71_v52 = vpop.xlane.xlu1 %70  ;;  %v31_v49 = vld [vmem:[%s2268_s2] sm:$0x1] }
 0x13c   :  { %1808 = vrsqrt.f32 %v77_v50  ;;  %v75_v53 = vmul.f32 0.03125, %v71_v52  ;;  %v513_v50 = vadd.s32 8, %v2055_v48  ;;  %vm535_vm2 = vcmp.gt.s32.totalorder %v31_v49, 0  ;;  %v694_v49 = vld [vmem:[%s2269_s3 + $0x78] sm:$0xff] }
 0x13d   :  { %1810 = vrsqrt.f32 %v78_v51  ;;  %v2061_v51 = vand.u32 127, %v511_v47  ;;  %v539_v52 = vsub.s32 0, %v2055_v48  ;;  %v693_v47 = vld [vmem:[%s2269_s3 + $0x70] sm:$0xff] }
 0x13e   :  { %v79_v54 = vadd.f32 1e-05, %v75_v53  ;;  %v519_v53 = vshra.s32 %v513_v50, 4 }
 0x13f   :  { %vm528_vm4 = vcmp.le.s32.totalorder %v2061_v51, %v513_v50  ;;  %vm527_vm6 = vcmp.le.s32.totalorder %v2061_v51, %v2055_v48 }
 0x140   :  { %1812 = vrsqrt.f32 %v79_v54  ;;  %v522_v54 = vshra.s32 %v2061_v51, 4 }
 0x142   :  { %v1807_v55 = vpop.eup %1806  ;;  %vm524_vm3 = vcmp.eq.s32.totalorder %v519_v53, %v522_v54 }
 0x143   :  { %v84_v57 = vmul.f32 %v1807_v55, %v52_v12  ;;  %v1708_v12 = vpack.c.bf16 %v213_v6, %v212_v4  ;;  %v1897_v55 = vmov 0   ;;  %vm532_vm7 = vmand %vm528_vm4, %vm524_vm3 }
 0x145   :  { %v92_v59 = vmul.f32 %v1404_v56, %v84_v57  ;;  %v518_v57 = vshra.s32 %v2055_v48, 4 }
 0x146   :  { %v1809_v60 = vpop.eup %1808 }
 0x147   :  { %v1811_v61 = vpop.eup %1810  ;;  %v100_v62 = vadd.f32 %v1405_v58, %v92_v59  ;;  %v85_v63 = vmul.f32 %v1809_v60, %v53_v20  ;;  %v514_v59 = vadd.s32 16, %v2055_v48  ;;  %vm523_vm5 = vcmp.eq.s32.totalorder %v518_v57, %v522_v54 }
 0x148   :  { %v86_v3 = vmul.f32 %v1811_v61, %v1970_v13  ;;  %vm531_vm9 = vmand %vm527_vm6, %vm523_vm5  ;;  %vm1899_vm5 = vmmov 0  }
 0x149   :  { %1546 = vmatprep.mubr.msk.f32.mxu1 %vm34_vm0, %v100_v62  ;;  %1574 = vmatprep.mubr.msk.f32.mxu0 %vm34_vm0, %v100_v62  ;;  %v93_v7 = vmul.f32 %v1404_v56, %v85_v63  ;;  %vm529_vm14 = vcmp.le.s32.totalorder %v2061_v51, %v514_v59 }
 0x14a   :  { %v1813_v8 = vpop.eup %1812  ;;  %v94_v9 = vmul.f32 %v1404_v56, %v86_v3 }
 0x14b   :  { %v101_v10 = vadd.f32 %v1405_v58, %v93_v7  ;;  %v87_v11 = vmul.f32 %v1813_v8, %v1976_v21 }
 0x14c   :  { %v102_v13 = vadd.f32 %v1405_v58, %v94_v9 }
 0x14d   :  { %1547 = vmatmul.mubr.msk.f32.vlgmr.msra.gmra.mrb[0].mxu1 %vm34_vm0, %v101_v10  ;;  %1575 = vmatmul.mubr.msk.f32.vlgmr.msra.gmra.mrb[0].mxu0 %vm34_vm0, %v101_v10  ;;  %v95_v14 = vmul.f32 %v1404_v56, %v87_v11  ;;  %v536_v56 = vsel %vm535_vm2, 1, %v1897_v55 }
 0x14e   :  { %1549 = vmatprep.mubr.msk.f32.mxu1 %vm34_vm0, %v102_v13  ;;  %1707 = vmatpush3.bf16.msra.mxu1 %v1704_v42  ;;  %v540_v60 = vrot.slane %v536_v56, %v539_v52 }
 0x14f   :  { %1577 = vmatprep.mubr.msk.f32.mxu0 %vm34_vm0, %v102_v13  ;;  %v103_v15 = vadd.f32 %v1405_v58, %v95_v14  ;;  %1709 = vmatprep.subr.bf16.mxu1 %v1708_v12  ;;  %v515_v58 = vadd.s32 24, %v2055_v48 }
 0x150   :  { %vm541_vm8 = vcmp.eq.s32.totalorder %v540_v60, 1 }
 0x151   :  { %1550 = vmatmul.mubr.msk.f32.gmra.mrb[2].mxu1 %vm34_vm0, %v103_v15  ;;  %1578 = vmatmul.mubr.msk.f32.gmra.mrb[2].mxu0 %vm34_vm0, %v103_v15  ;;  %v521_v61 = vshra.s32 %v515_v58, 4  ;;  %vm530_vm11 = vcmp.le.s32.totalorder %v2061_v51, %v515_v58  ;;  %vm543_vm12 = vmand %vm532_vm7, %vm541_vm8  ;;  %vm1370_vm7 = vcmp.eq.s32.totalorder %v2055_v48, 0 }
 0x152   :  { %1711 = vmatpush3.bf16.msra.mxu1 %v1708_v12  ;;  %1560 = vmatprep.mubr.msk.f32.mxu1 %vm34_vm0, %v100_v62  ;;  %v520_v62 = vshra.s32 %v514_v59, 4  ;;  %vm542_vm15 = vmand %vm531_vm9, %vm541_vm8  ;;  %vm1357_vm9 = vcmask 1041408  }
 0x153   :  { %vm526_vm10 = vcmp.eq.s32.totalorder %v521_v61, %v522_v54 }
 0x154   :  { %vm525_vm13 = vcmp.eq.s32.totalorder %v520_v62, %v522_v54  ;;  %v1744_v54 = vpack.c.bf16 %v694_v49, %v693_v47 }
 0x155   :  { %1561 = vmatmul.mubr.msk.f32.vlgmr.msra.gmra.mrb[4].mxu1 %vm34_vm0, %v101_v10  ;;  %vm533_vm2 = vmand %vm529_vm14, %vm525_vm13 }
 0x156   :  { %1563 = vmatprep.mubr.msk.f32.mxu1 %vm34_vm0, %v102_v13  ;;  %vm544_vm4 = vmand %vm533_vm2, %vm541_vm8 }
 0x159   :  { %1564 = vmatmul.mubr.msk.f32.gmra.mrb[6].mxu1 %vm34_vm0, %v103_v15 }
 0x220   :  { %v1548_v18 = vpop.f32.mrb[0].mxu1  ;;  %v1576_v19 = vpop.f32.mrb[0].mxu0 }
 0x221   :  { %v385_v20 = vadd.f32 %v1576_v19, %v1416_v16  ;;  %v191_v21 = vpop.f32.mrb[1].mxu1  ;;  %v379_v22 = vpop.f32.mrb[1].mxu0  ;;  %v197_v44 = vadd.f32 %v1548_v18, %v1406_v17 }
 0x222   :  { %v192_v23 = vadd.f32 %v1406_v17, %v191_v21  ;;  %v380_v24 = vadd.f32 %v1416_v16, %v379_v22 }
 0x224   :  { %v1732_v25 = vpack.c.bf16 %v385_v20, %v380_v24  ;;  %v1551_v26 = vpop.f32.mrb[2].mxu1  ;;  %v1579_v27 = vpop.f32.mrb[2].mxu0  ;;  %1588 = vmatprep.mubr.msk.f32.mxu1 %vm34_vm0, %v192_v23 }
 0x225   :  { %v395_v28 = vadd.f32 %v1579_v27, %v1416_v16  ;;  %v201_v29 = vpop.f32.mrb[3].mxu1  ;;  %v389_v30 = vpop.f32.mrb[3].mxu0  ;;  %v207_v46 = vadd.f32 %v1551_v26, %v1406_v17 }
 0x226   :  { %v390_v31 = vadd.f32 %v1416_v16, %v389_v30  ;;  %1733 = vmatprep.subr.bf16.mxu0 %v1732_v25  ;;  %v202_v45 = vadd.f32 %v1406_v17, %v201_v29 }
 0x227   :  { %1735 = vmatpush3.bf16.msra.mxu0 %v1732_v25 }
 0x228   :  { %v1736_v33 = vpack.c.bf16 %v395_v28, %v390_v31  ;;  %v1562_v34 = vpop.f32.mrb[4].mxu1 }
 0x229   :  { %v291_v35 = vadd.f32 %v1562_v34, %v1411_v32  ;;  %v285_v36 = vpop.f32.mrb[5].mxu1 }
 0x22a   :  { %v286_v37 = vadd.f32 %v1411_v32, %v285_v36  ;;  %1737 = vmatprep.subr.bf16.mxu0 %v1736_v33 }
 0x22b   :  { %1739 = vmatpush3.bf16.msra.mxu0 %v1736_v33 }
 0x22c   :  { %v1720_v38 = vpack.c.bf16 %v291_v35, %v286_v37  ;;  %v1565_v39 = vpop.f32.mrb[6].mxu1 }
 0x22d   :  { %v301_v40 = vadd.f32 %v1565_v39, %v1411_v32  ;;  %v295_v41 = vpop.f32.mrb[7].mxu1  ;;  %v691_v39 = vld [vmem:[%s2269_s3 + $0x60] sm:$0xff] }
 0x22e   :  { %v296_v42 = vadd.f32 %v1411_v32, %v295_v41  ;;  %1722 = vmatprep.subr.msk.bf16.mxu1 %vm1721_vm1, %v1720_v38 }
 0x22f   :  { %1725 = vmatpush3.bf16.xpose.msk.msra.mxu1 %vm1721_vm1, %v1720_v38 }
 0x230   :  { %v1726_v43 = vpack.c.bf16 %v301_v40, %v296_v42  ;;  %v692_v40 = vld [vmem:[%s2269_s3 + $0x68] sm:$0xff] }
 0x231   :  { %v1740_v41 = vpack.c.bf16 %v692_v40, %v691_v39  ;;  %v877_v39 = vld [vmem:[%s2270_s4 + $0x10] sm:$0xff]  ;;  %v878_v40 = vld [vmem:[%s2270_s4 + $0x18] sm:$0xff] }
 0x232   :  { %1728 = vmatprep.subr.msk.bf16.mxu1 %vm1721_vm1, %v1726_v43 }
 0x233   :  { %1741 = vmatprep.subr.bf16.mxu0 %v1740_v41 }
 0x237   :  { %1731 = vmatpush3.bf16.xpose.msk.msra.mxu1 %vm1721_vm1, %v1726_v43  ;;  %vm534_vm1 = vmand %vm530_vm11, %vm526_vm10 }
 0x238   :  { %vm545_vm3 = vmand %vm534_vm1, %vm541_vm8  ;;  %vm1374_vm8 = vcmp.eq.s32.totalorder %v2055_v48, 1 }
 0x23e   :  { %1589 = vmatmul.mubr.msk.f32.vlgmr.msra.gmra.mrb[8].mxu1 %vm34_vm0, %v197_v44 }
 0x23f   :  { %1591 = vmatprep.mubr.msk.f32.mxu1 %vm34_vm0, %v202_v45 }
 0x242   :  { %1592 = vmatmul.mubr.msk.f32.gmra.mrb[10].mxu1 %vm34_vm0, %v207_v46 }
 0x311   :  { %v1590_v63 = vpop.f32.mrb[8].mxu1 }
 0x312   :  { %v508_v3 = vmul.f32 0.17677669, %v1590_v63  ;;  %v488_v4 = vpop.f32.mrb[9].mxu1 }
 0x313   :  { %v507_v6 = vmul.f32 0.17677669, %v488_v4 }
 0x314   :  { %v547_v7 = vsel %vm543_vm12, %v508_v3, -1e+09  ;;  %v1437_v3 = vld [vmem:[%s2269_s3 + $0x103] ss:$0 sm:$0xff] }
 0x315   :  { %v1593_v8 = vpop.f32.mrb[10].mxu1  ;;  %v553_v9 = vsel %vm34_vm0, %v547_v7, -inf  ;;  %v546_v10 = vsel %vm542_vm15, %v507_v6, -1e+09 }
 0x316   :  { %v510_v11 = vmul.f32 0.17677669, %v1593_v8  ;;  %554 = vmax.xlane.f32.xlu1 %v553_v9  ;;  %v498_v12 = vpop.f32.mrb[11].mxu1  ;;  %v550_v13 = vsel %vm34_vm0, %v546_v10, -inf }
 0x317   :  { %v509_v14 = vmul.f32 0.17677669, %v498_v12  ;;  %551 = vmax.xlane.f32.xlu0 %v550_v13 }
 0x318   :  { %v549_v15 = vsel %vm545_vm3, %v510_v11, -1e+09 }
 0x319   :  { %v559_v16 = vsel %vm34_vm0, %v549_v15, -inf  ;;  %v548_v17 = vsel %vm544_vm4, %v509_v14, -1e+09 }
 0x31a   :  { %560 = vmax.xlane.f32.xlu1 %v559_v16  ;;  %v556_v18 = vsel %vm34_vm0, %v548_v17, -inf }
 0x31b   :  { %557 = vmax.xlane.f32.xlu0 %v556_v18 }
 0x3a3   :  { %v555_v19 = vpop.xlane.xlu1 %554 }
 0x3a4   :  { %v563_v20 = vsub.f32 %v547_v7, %v555_v19  ;;  %v552_v21 = vpop.xlane.xlu0 %551 }
 0x3a5   :  { %v562_v22 = vsub.f32 %v546_v10, %v552_v21 }
 0x3a6   :  { %v568_v23 = vmul.f32 1.442695, %v563_v20 }
 0x3a7   :  { %v566_v24 = vmul.f32 1.442695, %v562_v22  ;;  %v561_v25 = vpop.xlane.xlu1 %560 }
 0x3a8   :  { %1814 = vpow2.f32 %v568_v23  ;;  %v565_v26 = vsub.f32 %v549_v15, %v561_v25  ;;  %v558_v27 = vpop.xlane.xlu0 %557 }
 0x3a9   :  { %1816 = vpow2.f32 %v566_v24  ;;  %v564_v28 = vsub.f32 %v548_v17, %v558_v27 }
 0x3aa   :  { %v572_v29 = vmul.f32 1.442695, %v565_v26 }
 0x3ab   :  { %v570_v30 = vmul.f32 1.442695, %v564_v28 }
 0x3ac   :  { %1818 = vpow2.f32 %v572_v29 }
 0x3ad   :  { %1820 = vpow2.f32 %v570_v30 }
 0x3b2   :  { %v1815_v31 = vpop.eup %1814 }
 0x3b3   :  { %v1817_v32 = vpop.eup %1816  ;;  %v577_v33 = vsel %vm34_vm0, %v1815_v31, 0.0 }
 0x3b4   :  { %578 = vadd.xlane.f32.xlu1 %v577_v33  ;;  %v574_v34 = vsel %vm34_vm0, %v1817_v32, 0.0 }
 0x3b5   :  { %575 = vadd.xlane.f32.xlu0 %v574_v34 }
 0x3b6   :  { %v1819_v35 = vpop.eup %1818 }
 0x3b7   :  { %v1821_v36 = vpop.eup %1820  ;;  %v583_v37 = vsel %vm34_vm0, %v1819_v35, 0.0 }
 0x3b8   :  { %584 = vadd.xlane.f32.xlu1 %v583_v37  ;;  %v580_v38 = vsel %vm34_vm0, %v1821_v36, 0.0  ;;  %v876_v37 = vld [vmem:[%s2270_s4 + $0x8] sm:$0xff] }
 0x3b9   :  { %581 = vadd.xlane.f32.xlu0 %v580_v38 }
 0x441   :  { %v579_v42 = vpop.xlane.xlu1 %578 }
 0x442   :  { %1822 = vrcp.f32 %v579_v42  ;;  %v576_v43 = vpop.xlane.xlu0 %575 }
 0x443   :  { %1824 = vrcp.f32 %v576_v43 }
 0x445   :  { %v585_v44 = vpop.xlane.xlu1 %584 }
 0x446   :  { %1826 = vrcp.f32 %v585_v44  ;;  %v582_v45 = vpop.xlane.xlu0 %581 }
 0x447   :  { %1828 = vrcp.f32 %v582_v45 }
 0x44c   :  { %v1823_v46 = vpop.eup %1822 }
 0x44d   :  { %v1825_v50 = vpop.eup %1824  ;;  %v591_v53 = vmul.f32 %v1823_v46, %v1815_v31 }
 0x44e   :  { %v590_v52 = vmul.f32 %v1825_v50, %v1817_v32 }
 0x450   :  { %v1827_v55 = vpop.eup %1826  ;;  %1602 = vmatprep.mubr.msk.f32.mxu0 %vm34_vm0, %v590_v52 }
 0x451   :  { %v1829_v56 = vpop.eup %1828  ;;  %1603 = vmatmul.mubr.msk.f32.vlgmr.msra.gmra.mrb[4].mxu0 %vm34_vm0, %v591_v53  ;;  %v593_v58 = vmul.f32 %v1827_v55, %v1819_v35 }
 0x452   :  { %v592_v57 = vmul.f32 %v1829_v56, %v1821_v36  ;;  %1743 = vmatpush3.bf16.msra.mxu0 %v1740_v41  ;;  %v875_v36 = vld [vmem:[%s2270_s4] sm:$0xff]  ;;  %v1752_v41 = vpack.c.bf16 %v878_v40, %v877_v39 }
 0x453   :  { %1745 = vmatprep.subr.bf16.mxu0 %v1744_v54  ;;  %v1748_v38 = vpack.c.bf16 %v876_v37, %v875_v36  ;;  %v1032_v36 = vld [vmem:[%s2269_s3 + $0xf8] sm:$0xff] }
 0x454   :  { %1605 = vmatprep.mubr.msk.f32.mxu0 %vm34_vm0, %v592_v57  ;;  %v1438_v57 = vld [vmem:[%s2269_s3 + $0x107] ss:$0 sm:$0xff] }
 0x455   :  { %1606 = vmatmul.mubr.msk.f32.gmra.mrb[6].mxu0 %vm34_vm0, %v593_v58  ;;  %1749 = vmatprep.subr.bf16.mxu1 %v1748_v38 }
 0x456   :  { %1747 = vmatpush3.bf16.msra.mxu0 %v1744_v54  ;;  %1751 = vmatpush3.bf16.msra.mxu1 %v1748_v38  ;;  %v1440_v38 = vld [vmem:[%s2270_s4 + $0x40] ss:$0 sm:$0xff] }
 0x457   :  { %1753 = vmatprep.subr.bf16.mxu1 %v1752_v41 }
 0x45a   :  { %1755 = vmatpush3.bf16.msra.mxu1 %v1752_v41 }
 0x524   :  { %v1604_v59 = vpop.f32.mrb[4].mxu0 }
 0x525   :  { %v672_v60 = vpop.f32.mrb[5].mxu0 }
 0x526   :  { %1616 = vmatprep.mubr.msk.f32.mxu0 %vm34_vm0, %v672_v60 }
 0x527   :  { %1617 = vmatmul.mubr.msk.f32.vlgmr.msra.gmra.mrb[8].mxu0 %vm34_vm0, %v1604_v59 }
 0x528   :  { %v1607_v61 = vpop.f32.mrb[6].mxu0 }
 0x529   :  { %v682_v62 = vpop.f32.mrb[7].mxu0 }
 0x52a   :  { %1619 = vmatprep.mubr.msk.f32.mxu0 %vm34_vm0, %v682_v62 }
 0x52b   :  { %1620 = vmatmul.mubr.msk.f32.gmra.mrb[10].mxu0 %vm34_vm0, %v1607_v61  ;;  %v1439_v61 = vld [vmem:[%s2269_s3 + $0x108] ss:$0 sm:$0xff] }
 0x5fa   :  { %v1618_v63 = vpop.f32.mrb[8].mxu0 }
 0x5fb   :  { %v793_v4 = vadd.f32 %v1618_v63, %v1953_v2  ;;  %v773_v6 = vpop.f32.mrb[9].mxu0 }
 0x5fc   :  { %v792_v7 = vadd.f32 %v773_v6, %v1943_v0 }
 0x5fd   :  { %v2110_v8 = vadd.f32 %v1437_v3, %v793_v4 }
 0x5fe   :  { %v2112_v9 = vadd.f32 %v1437_v3, %v792_v7  ;;  %v1621_v10 = vpop.f32.mrb[10].mxu0 }
 0x5ff   :  { %v795_v11 = vadd.f32 %v1621_v10, %v1962_v5  ;;  %v783_v12 = vpop.f32.mrb[11].mxu0  ;;  %v810_v13 = vsel %vm34_vm0, %v2110_v8, 0.0 }
 0x600   :  { %v794_v14 = vadd.f32 %v783_v12, %v1948_v1  ;;  %811 = vadd.xlane.f32.xlu1 %v810_v13  ;;  %v807_v2 = vsel %vm34_vm0, %v2112_v9, 0.0 }
 0x601   :  { %v2120_v15 = vadd.f32 %v1437_v3, %v795_v11  ;;  %808 = vadd.xlane.f32.xlu0 %v807_v2 }
 0x602   :  { %v2122_v0 = vadd.f32 %v1437_v3, %v794_v14 }
 0x603   :  { %v816_v16 = vsel %vm34_vm0, %v2120_v15, 0.0 }
 0x604   :  { %817 = vadd.xlane.f32.xlu1 %v816_v16  ;;  %v813_v5 = vsel %vm34_vm0, %v2122_v0, 0.0  ;;  %v1017_v16 = vld [vmem:[%s2269_s3 + $0x80] sm:$0xff] }
 0x605   :  { %814 = vadd.xlane.f32.xlu0 %v813_v5  ;;  %v1018_v5 = vld [vmem:[%s2269_s3 + $0x88] sm:$0xff] }
 0x68d   :  { %v812_v17 = vpop.xlane.xlu1 %811 }
 0x68e   :  { %v820_v18 = vmul.f32 0.03125, %v812_v17  ;;  %v809_v1 = vpop.xlane.xlu0 %808  ;;  %v1756_v17 = vpack.c.bf16 %v1018_v5, %v1017_v16 }
 0x68f   :  { %v819_v19 = vmul.f32 0.03125, %v809_v1  ;;  %v1020_v1 = vld [vmem:[%s2269_s3 + $0x98] sm:$0xff] }
 0x690   :  { %v824_v20 = vsub.f32 %v2110_v8, %v820_v18  ;;  %1757 = vmatprep.subr.bf16.mxu0 %v1756_v17  ;;  %v1019_v18 = vld [vmem:[%s2269_s3 + $0x90] sm:$0xff] }
 0x691   :  { %v823_v21 = vsub.f32 %v2112_v9, %v819_v19  ;;  %v818_v22 = vpop.xlane.xlu1 %817  ;;  %1759 = vmatpush3.bf16.msra.mxu0 %v1756_v17  ;;  %v1760_v19 = vpack.c.bf16 %v1020_v1, %v1019_v18 }
 0x692   :  { %v822_v23 = vmul.f32 0.03125, %v818_v22  ;;  %v815_v24 = vpop.xlane.xlu0 %814  ;;  %v828_v25 = vmul.f32 %v824_v20, %v824_v20 }
 0x693   :  { %v821_v26 = vmul.f32 0.03125, %v815_v24  ;;  %v827_v27 = vmul.f32 %v823_v21, %v823_v21  ;;  %1761 = vmatprep.subr.bf16.mxu0 %v1760_v19  ;;  %v1024_v24 = vld [vmem:[%s2269_s3 + $0xb8] sm:$0xff] }
 0x694   :  { %v826_v28 = vsub.f32 %v2120_v15, %v822_v23  ;;  %v834_v29 = vsel %vm34_vm0, %v828_v25, 0.0  ;;  %v1023_v23 = vld [vmem:[%s2269_s3 + $0xb0] sm:$0xff] }
 0x695   :  { %v825_v30 = vsub.f32 %v2122_v0, %v821_v26  ;;  %835 = vadd.xlane.f32.xlu1 %v834_v29  ;;  %v831_v31 = vsel %vm34_vm0, %v827_v27, 0.0  ;;  %1763 = vmatpush3.bf16.msra.mxu0 %v1760_v19  ;;  %v1768_v25 = vpack.c.bf16 %v1024_v24, %v1023_v23  ;;  %v1025_v26 = vld [vmem:[%s2269_s3 + $0xc0] sm:$0xff]  ;;  %v1026_v27 = vld [vmem:[%s2269_s3 + $0xc8] sm:$0xff]  ;;  %v1027_v29 = vld [vmem:[%s2269_s3 + $0xd0] sm:$0xff] }
 0x696   :  { %832 = vadd.xlane.f32.xlu0 %v831_v31  ;;  %v830_v32 = vmul.f32 %v826_v28, %v826_v28 }
 0x697   :  { %v829_v33 = vmul.f32 %v825_v30, %v825_v30 }
 0x698   :  { %v840_v34 = vsel %vm34_vm0, %v830_v32, 0.0  ;;  %v1029_v32 = vld [vmem:[%s2269_s3 + $0xe0] sm:$0xff] }
 0x699   :  { %841 = vadd.xlane.f32.xlu1 %v840_v34  ;;  %v837_v35 = vsel %vm34_vm0, %v829_v33, 0.0  ;;  %v1030_v33 = vld [vmem:[%s2269_s3 + $0xe8] sm:$0xff] }
 0x69a   :  { %838 = vadd.xlane.f32.xlu0 %v837_v35  ;;  %v1780_v34 = vpack.c.bf16 %v1030_v33, %v1029_v32  ;;  %v1031_v35 = vld [vmem:[%s2269_s3 + $0xf0] sm:$0xff] }
 0x69b   :  { %v1784_v37 = vpack.c.bf16 %v1032_v36, %v1031_v35 }
 0x722   :  { %v836_v42 = vpop.xlane.xlu1 %835 }
 0x723   :  { %v844_v43 = vmul.f32 0.03125, %v836_v42  ;;  %v833_v44 = vpop.xlane.xlu0 %832 }
 0x724   :  { %v843_v45 = vmul.f32 0.03125, %v833_v44 }
 0x725   :  { %v848_v46 = vadd.f32 1e-05, %v844_v43 }
 0x726   :  { %v847_v47 = vadd.f32 1e-05, %v843_v45  ;;  %v842_v49 = vpop.xlane.xlu1 %841 }
 0x727   :  { %1830 = vrsqrt.f32 %v848_v46  ;;  %v846_v50 = vmul.f32 0.03125, %v842_v49  ;;  %v839_v52 = vpop.xlane.xlu0 %838 }
 0x728   :  { %1832 = vrsqrt.f32 %v847_v47  ;;  %v845_v53 = vmul.f32 0.03125, %v839_v52 }
 0x729   :  { %v850_v54 = vadd.f32 1e-05, %v846_v50 }
 0x72a   :  { %v849_v55 = vadd.f32 1e-05, %v845_v53 }
 0x72b   :  { %1834 = vrsqrt.f32 %v850_v54 }
 0x72c   :  { %1836 = vrsqrt.f32 %v849_v55 }
 0x731   :  { %v1831_v56 = vpop.eup %1830 }
 0x732   :  { %v1833_v58 = vpop.eup %1832  ;;  %v856_v59 = vmul.f32 %v1831_v56, %v824_v20  ;;  %v1021_v20 = vld [vmem:[%s2269_s3 + $0xa0] sm:$0xff] }
 0x733   :  { %v855_v60 = vmul.f32 %v1833_v58, %v823_v21  ;;  %v1022_v21 = vld [vmem:[%s2269_s3 + $0xa8] sm:$0xff] }
 0x734   :  { %v864_v62 = vmul.f32 %v1438_v57, %v856_v59  ;;  %v1764_v22 = vpack.c.bf16 %v1022_v21, %v1021_v20 }
 0x735   :  { %v1835_v63 = vpop.eup %1834  ;;  %v863_v3 = vmul.f32 %v1438_v57, %v855_v60 }
 0x736   :  { %v1837_v4 = vpop.eup %1836  ;;  %v858_v6 = vmul.f32 %v1835_v63, %v826_v28  ;;  %v872_v11 = vadd.f32 %v1439_v61, %v864_v62  ;;  %1765 = vmatprep.subr.bf16.mxu0 %v1764_v22  ;;  %v1772_v28 = vpack.c.bf16 %v1026_v27, %v1025_v26  ;;  %v1445_v26 = vld [vmem:[%s2269_s3 + $0x104] ss:$0 sm:$0xff] }
 0x737   :  { %v871_v7 = vadd.f32 %v1439_v61, %v863_v3  ;;  %v857_v10 = vmul.f32 %v1837_v4, %v825_v30  ;;  %1767 = vmatpush3.bf16.msra.mxu0 %v1764_v22  ;;  %v1028_v30 = vld [vmem:[%s2269_s3 + $0xd8] sm:$0xff] }
 0x738   :  { %v866_v12 = vmul.f32 %v1438_v57, %v858_v6  ;;  %1769 = vmatprep.subr.bf16.mxu0 %v1768_v25  ;;  %v1776_v31 = vpack.c.bf16 %v1028_v30, %v1027_v29 }
 0x739   :  { %1630 = vmatprep.mubr.msk.f32.mxu1 %vm34_vm0, %v871_v7  ;;  %v865_v13 = vmul.f32 %v1438_v57, %v857_v10 }
 0x73a   :  { %1631 = vmatmul.mubr.msk.f32.vlgmr.msra.gmra.mrb[12].mxu1 %vm34_vm0, %v872_v11  ;;  %v874_v2 = vadd.f32 %v1439_v61, %v866_v12 }
 0x73b   :  { %v873_v14 = vadd.f32 %v1439_v61, %v865_v13  ;;  %1771 = vmatpush3.bf16.msra.mxu0 %v1768_v25 }
 0x73c   :  { %1773 = vmatprep.subr.bf16.mxu0 %v1772_v28 }
 0x73d   :  { %1633 = vmatprep.mubr.msk.f32.mxu1 %vm34_vm0, %v873_v14 }
 0x73e   :  { %1634 = vmatmul.mubr.msk.f32.gmra.mrb[14].mxu1 %vm34_vm0, %v874_v2 }
 0x73f   :  { %1775 = vmatpush3.bf16.msra.mxu0 %v1772_v28 }
 0x740   :  { %1777 = vmatprep.subr.bf16.mxu0 %v1776_v31 }
 0x743   :  { %1779 = vmatpush3.bf16.msra.mxu0 %v1776_v31 }
 0x744   :  { %1781 = vmatprep.subr.bf16.mxu0 %v1780_v34 }
 0x747   :  { %1783 = vmatpush3.bf16.msra.mxu0 %v1780_v34 }
 0x748   :  { %1785 = vmatprep.subr.bf16.mxu0 %v1784_v37 }
 0x74b   :  { %1787 = vmatpush3.bf16.msra.mxu0 %v1784_v37 }
 0x80d   :  { %v1632_v39 = vpop.f32.mrb[12].mxu1 }
 0x80e   :  { %v968_v40 = vadd.f32 %v1632_v39, %v1440_v38  ;;  %v962_v41 = vpop.f32.mrb[13].mxu1 }
 0x80f   :  { %v963_v42 = vadd.f32 %v1440_v38, %v962_v41 }
 0x810   :  { %v982_v43 = vmul.f32 %v968_v40, %v968_v40 }
 0x811   :  { %v981_v44 = vmul.f32 %v963_v42, %v963_v42  ;;  %v1635_v45 = vpop.f32.mrb[14].mxu1 }
 0x812   :  { %v986_v46 = vmul.f32 %v982_v43, %v968_v40  ;;  %v978_v47 = vadd.f32 %v1635_v45, %v1440_v38  ;;  %v972_v49 = vpop.f32.mrb[15].mxu1 }
 0x813   :  { %v985_v50 = vmul.f32 %v981_v44, %v963_v42  ;;  %v973_v52 = vadd.f32 %v1440_v38, %v972_v49 }
 0x814   :  { %v990_v53 = vmul.f32 0.044715, %v986_v46  ;;  %v984_v54 = vmul.f32 %v978_v47, %v978_v47 }
 0x815   :  { %v989_v55 = vmul.f32 0.044715, %v985_v50  ;;  %v983_v56 = vmul.f32 %v973_v52, %v973_v52 }
 0x816   :  { %v994_v57 = vadd.f32 %v990_v53, %v968_v40  ;;  %v988_v58 = vmul.f32 %v984_v54, %v978_v47 }
 0x817   :  { %v993_v59 = vadd.f32 %v989_v55, %v963_v42  ;;  %v987_v60 = vmul.f32 %v983_v56, %v973_v52 }
 0x818   :  { %v998_v61 = vmul.f32 0.7978846, %v994_v57  ;;  %v992_v62 = vmul.f32 0.044715, %v988_v58 }
 0x819   :  { %v997_v63 = vmul.f32 0.7978846, %v993_v59  ;;  %v991_v3 = vmul.f32 0.044715, %v987_v60  ;;  %v1898_v60 = vmov 0.0|0.0  }
 0x81a   :  { %1838 = vtanh.f32 %v998_v61  ;;  %v996_v4 = vadd.f32 %v992_v62, %v978_v47  ;;  %1788 = vmatprep.subr.bf16.mxu1 %v1898_v60  ;;  %v1900_v61 = vmov 0.0  }
 0x81b   :  { %v995_v6 = vadd.f32 %v991_v3, %v973_v52  ;;  %1840 = vtanh.f32 %v997_v63  ;;  %1682 = vmatprep.mubr.msk.f32.mxu1 %vm1899_vm5, %v1900_v61 }
 0x81c   :  { %v1000_v7 = vmul.f32 0.7978846, %v996_v4 }
 0x81d   :  { %v999_v10 = vmul.f32 0.7978846, %v995_v6 }
 0x81e   :  { %1842 = vtanh.f32 %v1000_v7 }
 0x81f   :  { %1844 = vtanh.f32 %v999_v10 }
 0x824   :  { %v1839_v11 = vpop.eup %1838 }
 0x825   :  { %v1841_v12 = vpop.eup %1840  ;;  %v1006_v13 = vadd.f32 1.0, %v1839_v11 }
 0x826   :  { %v1005_v14 = vadd.f32 1.0, %v1841_v12 }
 0x827   :  { %v1010_v2 = vmul.f32 0.5, %v1006_v13 }
 0x828   :  { %v1843_v16 = vpop.eup %1842  ;;  %v1009_v5 = vmul.f32 0.5, %v1005_v14 }
 0x829   :  { %v1845_v17 = vpop.eup %1844  ;;  %v1008_v18 = vadd.f32 1.0, %v1843_v16  ;;  %v1014_v20 = vmul.f32 %v1010_v2, %v968_v40 }
 0x82a   :  { %v1013_v1 = vmul.f32 %v1009_v5, %v963_v42  ;;  %v1007_v19 = vadd.f32 1.0, %v1845_v17  ;;  %v1446_v5 = vld [vmem:[%s2269_s3 + $0x109] ss:$0 sm:$0xff] }
 0x82b   :  { %v1012_v21 = vmul.f32 0.5, %v1008_v18 }
 0x82c   :  { %1668 = vmatprep.mubr.f32.mxu0 %v1013_v1  ;;  %v1011_v22 = vmul.f32 0.5, %v1007_v19  ;;  %v1447_v19 = vld [vmem:[%s2269_s3 + $0x10a] ss:$0 sm:$0xff] }
 0x82d   :  { %1669 = vmatmul.mubr.f32.vlgmr.msra.gmra.mrb[12].mxu0 %v1014_v20  ;;  %v1016_v24 = vmul.f32 %v1012_v21, %v978_v47  ;;  %v1201_v21 = vmul.u32 16, %v2055_v48 }
 0x82e   :  { %v1015_v23 = vmul.f32 %v1011_v22, %v973_v52 }
 0x830   :  { %1671 = vmatprep.mubr.f32.mxu0 %v1015_v23 }
 0x831   :  { %1672 = vmatmul.mubr.f32.gmra.mrb[14].mxu0 %v1016_v24 }
 0x900   :  { %v1670_v25 = vpop.f32.mrb[12].mxu0 }
 0x901   :  { %v1119_v27 = vadd.f32 %v1670_v25, %v2110_v8  ;;  %v1099_v28 = vpop.f32.mrb[13].mxu0 }
 0x902   :  { %v1118_v29 = vadd.f32 %v1099_v28, %v2112_v9 }
 0x903   :  { %v1128_v30 = vadd.f32 %v1445_v26, %v1119_v27 }
 0x904   :  { %v1673_v31 = vpop.f32.mrb[14].mxu0  ;;  %v1127_v32 = vadd.f32 %v1445_v26, %v1118_v29 }
 0x905   :  { %v1121_v33 = vadd.f32 %v1673_v31, %v2120_v15  ;;  %v1109_v34 = vpop.f32.mrb[15].mxu0  ;;  %v1136_v35 = vsel %vm34_vm0, %v1128_v30, 0.0 }
 0x906   :  { %v1120_v36 = vadd.f32 %v1109_v34, %v2122_v0  ;;  %1137 = vadd.xlane.f32.xlu1 %v1136_v35  ;;  %v1133_v37 = vsel %vm34_vm0, %v1127_v32, 0.0  ;;  %v1279_v35 = vld [vmem:[%s2270_s4 + $0x20] sm:$0xff] }
 0x907   :  { %1134 = vadd.xlane.f32.xlu0 %v1133_v37  ;;  %v1130_v38 = vadd.f32 %v1445_v26, %v1121_v33 }
 0x908   :  { %v1129_v39 = vadd.f32 %v1445_v26, %v1120_v36  ;;  %v1280_v36 = vld [vmem:[%s2270_s4 + $0x28] sm:$0xff] }
 0x909   :  { %v1142_v8 = vsel %vm34_vm0, %v1130_v38, 0.0 }
 0x90a   :  { %1143 = vadd.xlane.f32.xlu1 %v1142_v8  ;;  %v1139_v9 = vsel %vm34_vm0, %v1129_v39, 0.0  ;;  %v1281_v8 = vld [vmem:[%s2270_s4 + $0x30] sm:$0xff] }
 0x90b   :  { %1140 = vadd.xlane.f32.xlu0 %v1139_v9  ;;  %v1282_v9 = vld [vmem:[%s2270_s4 + $0x38] sm:$0xff]  ;;  %s1901_s4 = smov [#allocation4]  }
 0x90c   :  { %s1392_s1 = sshll.u32 %s1901_s4, 4  ;;  %s1393_s1 = int_to_ptr.vmem [resolvable:$true] %s1392_s1 }
 0x90d   :  { %s1870_s9 = scalar_lea.vmem %s1393_s1, 32  ;;  %p1875_p6 = scmp.lt.s32.totalorder %s1393_s1, %s1393_s1 }
 0x90e   :  { %p1871_p5 = scmp.ne.s32.totalorder %s1393_s1, %s1870_s9  ;;  %p1876_p7 = scmp.lt.s32.totalorder %s1870_s9, %s1870_s9 }
 0x910   :  { %p1877_p8 = por %p1876_p7, %p1875_p6 }
 0x912   :  { %p1878_p9 = pnand %p1877_p8, %p1871_p5 }
 0x993   :  { %v1138_v40 = vpop.xlane.xlu1 %1137 }
 0x994   :  { %v1146_v41 = vmul.f32 0.03125, %v1138_v40  ;;  %v1135_v15 = vpop.xlane.xlu0 %1134  ;;  %v1798_v40 = vpack.c.bf16 %v1282_v9, %v1281_v8 }
 0x995   :  { %v1145_v42 = vmul.f32 0.03125, %v1135_v15 }
 0x996   :  { %v1150_v43 = vsub.f32 %v1128_v30, %v1146_v41  ;;  %v1202_v30 = vadd.s32 10, %v1201_v21 }
 0x997   :  { %v1149_v44 = vsub.f32 %v1127_v32, %v1145_v42  ;;  %v1144_v45 = vpop.xlane.xlu1 %1143  ;;  %v1372_v42 = vstv %s1371_s7 }
 0x998   :  { %v1148_v0 = vmul.f32 0.03125, %v1144_v45  ;;  %v1141_v46 = vpop.xlane.xlu0 %1140  ;;  %v1154_v47 = vmul.f32 %v1150_v43, %v1150_v43  ;;  %vm1203_vm6 = vcmp.eq.s32.totalorder %v2061_v51, %v1202_v30 }
 0x999   :  { %v1147_v49 = vmul.f32 0.03125, %v1141_v46  ;;  %v1153_v50 = vmul.f32 %v1149_v44, %v1149_v44 }
 0x99a   :  { %v1152_v52 = vsub.f32 %v1130_v38, %v1148_v0  ;;  %v1160_v53 = vsel %vm34_vm0, %v1154_v47, 0.0  ;;  %v1448_v38 = vsel %vm1203_vm6, 1.0, %v1900_v61 }
 0x99b   :  { %v1151_v54 = vsub.f32 %v1129_v39, %v1147_v49  ;;  %1161 = vadd.xlane.f32.xlu1 %v1160_v53  ;;  %v1157_v55 = vsel %vm34_vm0, %v1153_v50, 0.0  ;;  %v1795_v39 = vpack.c.bf16 %v1280_v36, %v1279_v35 }
 0x99c   :  { %1158 = vadd.xlane.f32.xlu0 %v1157_v55  ;;  %v1156_v56 = vmul.f32 %v1152_v52, %v1152_v52 }
 0x99d   :  { %v1155_v57 = vmul.f32 %v1151_v54, %v1151_v54 }
 0x99e   :  { %v1166_v58 = vsel %vm34_vm0, %v1156_v56, 0.0 }
 0x99f   :  { %1167 = vadd.xlane.f32.xlu1 %v1166_v58  ;;  %v1163_v59 = vsel %vm34_vm0, %v1155_v57, 0.0 }
 0x9a0   :  { %1164 = vadd.xlane.f32.xlu0 %v1163_v59 }
 0xa28   :  { %v1162_v62 = vpop.xlane.xlu1 %1161 }
 0xa29   :  { %v1170_v63 = vmul.f32 0.03125, %v1162_v62  ;;  %v1159_v3 = vpop.xlane.xlu0 %1158 }
 0xa2a   :  { %v1169_v4 = vmul.f32 0.03125, %v1159_v3 }
 0xa2b   :  { %v1174_v6 = vadd.f32 1e-05, %v1170_v63 }
 0xa2c   :  { %v1173_v7 = vadd.f32 1e-05, %v1169_v4  ;;  %v1168_v10 = vpop.xlane.xlu1 %1167 }
 0xa2d   :  { %1846 = vrsqrt.f32 %v1174_v6  ;;  %v1172_v11 = vmul.f32 0.03125, %v1168_v10  ;;  %v1165_v12 = vpop.xlane.xlu0 %1164 }
 0xa2e   :  { %1848 = vrsqrt.f32 %v1173_v7  ;;  %v1171_v13 = vmul.f32 0.03125, %v1165_v12 }
 0xa2f   :  { %v1176_v14 = vadd.f32 1e-05, %v1172_v11 }
 0xa30   :  { %v1175_v2 = vadd.f32 1e-05, %v1171_v13 }
 0xa31   :  { %1850 = vrsqrt.f32 %v1176_v14 }
 0xa32   :  { %1852 = vrsqrt.f32 %v1175_v2 }
 0xa37   :  { %v1847_v16 = vpop.eup %1846 }
 0xa38   :  { %v1849_v17 = vpop.eup %1848  ;;  %v1182_v18 = vmul.f32 %v1847_v16, %v1150_v43  ;;  %v1373_v43 = vsel %vm1370_vm7, %v1372_v42, 0 }
 0xa39   :  { %v1181_v1 = vmul.f32 %v1849_v17, %v1149_v44  ;;  %v1376_v44 = vstv %s1451_s8 }
 0xa3a   :  { %v1190_v20 = vmul.f32 %v1446_v5, %v1182_v18  ;;  %v1377_v45 = vsel %vm1374_vm8, %v1376_v44, %v1373_v43 }
 0xa3b   :  { %v1851_v22 = vpop.eup %1850  ;;  %v1189_v23 = vmul.f32 %v1446_v5, %v1181_v1  ;;  %vm1378_vm10 = vcmp.eq.s32.totalorder %v2061_v51, %v1377_v45 }
 0xa3c   :  { %v1853_v24 = vpop.eup %1852  ;;  %v1184_v25 = vmul.f32 %v1851_v22, %v1152_v52  ;;  %v1198_v26 = vadd.f32 %v1447_v19, %v1190_v20 }
 0xa3d   :  { %v1183_v27 = vmul.f32 %v1853_v24, %v1151_v54  ;;  %v1197_v28 = vadd.f32 %v1447_v19, %v1189_v23 }
 0xa3e   :  { %v1192_v29 = vmul.f32 %v1446_v5, %v1184_v25 }
 0xa3f   :  { %v1789_v31 = vpack.c.bf16 %v1198_v26, %v1197_v28  ;;  %v1191_v32 = vmul.f32 %v1446_v5, %v1183_v27 }
 0xa40   :  { %v1200_v33 = vadd.f32 %v1447_v19, %v1192_v29 }
 0xa41   :  { %1790 = vmatpush3.bf16.msra.mxu1 %v1789_v31  ;;  %v1199_v34 = vadd.f32 %v1447_v19, %v1191_v32 }
 0xa42   :  { %1791 = vmatprep.subr.bf16.mxu1 %v1898_v60 }
 0xa43   :  { %v1792_v37 = vpack.c.bf16 %v1200_v33, %v1199_v34 }
 0xa45   :  { %1793 = vmatpush3.bf16.msra.mxu1 %v1792_v37 }
 0xa46   :  { %1794 = vmatprep.subr.bf16.mxu1 %v1898_v60 }
 0xa48   :  { %1683 = vmatmul.mubr.msk.f32.vlgmr.msra.gmra.mrb[16].mxu1 %vm34_vm0, %v1448_v38 }
 0xa49   :  { %1796 = vmatpush3.bf16.msra.mxu1 %v1795_v39  ;;  %1693 = vmatprep.mubr.msk.f32.mxu1 %vm1899_vm5, %v1900_v61 }
 0xa4a   :  { %1797 = vmatprep.subr.bf16.mxu1 %v1898_v60 }
 0xa4d   :  { %1799 = vmatpush3.bf16.msra.mxu1 %v1798_v40 }
 0xb1b   :  { %v1275_v41 = vpop.f32.mrb[16].mxu1 }
 0xb1c   :  { %v1684_v15 = vpop.f32.mrb[17].mxu1  ;;  %1694 = vmatmul.mubr.msk.f32.vlgmr.msra.gmra.mrb[18].mxu1 %vm34_vm0, %v1275_v41 }
 0xbef   :  { %v1352_v0 = vpop.f32.mrb[18].mxu1 }
 0xbf0   :  { %1356 = vst [vmem:[#allocation4] sm:$0x3] %v1352_v0  ;;  %v1695_v46 = vpop.f32.mrb[19].mxu1  ;;  %v1358_v47 = vsel %vm1357_vm9, %v1352_v0, -inf  ;;  %v1379_v49 = vsel %vm1378_vm10, %v1352_v0, 0.0 }
 0xbf1   :  { %1359 = vmax.xlane.f32.xlu0 %v1358_v47  ;;  %v1380_v50 = vsel %vm1357_vm9, %v1379_v49, 0.0 }
 0xbf5   :  { %1381 = vadd.xlane.f32.xlu0 %v1380_v50 }
 0xc7e   :  { %v1360_v52 = vpop.xlane.xlu0 %1359 }
 0xc7f   :  { %v1361_v53 = vsub.f32 %v1352_v0, %v1360_v52 }
 0xc81   :  { %v1362_v54 = vmul.f32 1.442695, %v1361_v53 }
 0xc83   :  { %1854 = vpow2.f32 %v1362_v54 }
 0xc8d   :  { %v1855_v55 = vpop.eup %1854 }
 0xc8e   :  { %v1364_v56 = vsel %vm1357_vm9, %v1855_v55, 0.0 }
 0xc8f   :  { %1365 = vadd.xlane.f32.xlu1 %v1364_v56 }
 0xc90   :  { %1881 = shalt.err (!%p1878_p9)
}
 0xc91   :  { %s1882_s12 = scalar_lea.hbm %s2271_s5, 32 }
 0xc92   :  { %p1883_p10 = scmp.ne.s32.totalorder %s2271_s5, %s1882_s12  ;;  %p1886_p11 = scmp.lt.u32.totalorder %s1882_s12, %s2271_s5 }
 0xc94   :  { %p1888_p12 = pnand %p1886_p11, %p1883_p10 }
 0xc96   :  { %1891 = shalt.err (!%p1888_p12)
}
 0xc97   :  { %1395 = dma.vmem_to_hbm [thread:$0]  %s1393_s1, 32, %s2271_s5, [#allocation5]   ;;  %v1382_v59 = vpop.xlane.xlu0 %1381  ;;  %vm1384_vm0 = vcmask 1024  }
 0xd1c   :  { %v1366_v48 = vpop.xlane.xlu1 %1365 }
 0xd1d   :  { %1856 = vlog2.f32 %v1366_v48 }
 0xd27   :  { %v1857_v51 = vpop.eup %1856 }
 0xd28   :  { %v1368_v57 = vmul.f32 0.6931472, %v1857_v51 }
 0xd2a   :  { %v1369_v58 = vadd.f32 %v1368_v57, %v1360_v52 }
 0xd2c   :  { %v1383_v60 = vsub.f32 %v1369_v58, %v1382_v59 }
 0xd2e   :  { %1385 = vst.msk [vmem:[%s2272_s6] sm:$0x3] %vm1384_vm0, %v1383_v60 }
 0xd2f   :  { %1894 = dma.done.wait [#allocation5], 32  }
 0xd30   :  { %1895 = vsyncadd [#allocation5], 4294967264 }
 0xd31   :  { %1403 = vsyncpa [#allocation5], 1 }

</bundles_post_ra>
